<compile_context>
chip_gen: v7x
topology: tpu7x:2x2x1
jax: 0.10.0
libtpu: 0.0.40
codegen_flags: <defaults>
</compile_context>

<pallas_src>
import functools

import jax
import jax.numpy as jnp
import numpy as np
from jax.experimental import pallas as pl
from jax.experimental.pallas import tpu as pltpu

_COMPUTE_DTYPE = jnp.bfloat16   # MXU input dtype; accumulation stays float32.


# --------------------------- hardware / tiling helpers ---------------------- #

def _tpu_vmem_capacity_bytes():
    """Physical VMEM of the local chip; conservative (v7x-sized) fallback."""
    try:
        return int(pltpu.get_tpu_info().vmem_capacity_bytes)
    except Exception:
        return 64 << 20


def _vmem_budgets():
    """(block-sizing budget, scoped-VMEM limit handed to Mosaic)."""
    cap = _tpu_vmem_capacity_bytes()
    block_budget = min(cap // 2, 64 << 20)          # v7x: 32 MiB, v5e/v6e: 64 MiB
    vmem_limit = min((cap * 3) // 4, 112 << 20)     # v7x: 48 MiB, v5e/v6e: 96 MiB
    return block_budget, int(vmem_limit)


def _pick_block_batch(n, per_image_bytes, fixed_bytes, budget_bytes,
                      rows_per_image, max_b=16):
    """Largest batch-block B that divides n, fits the VMEM budget and keeps the flat
    output's sublane (mult-of-8) constraint; prefers >= 2 grid steps (megacore)."""
    def ok(b):
        if n % b or b > max_b:
            return False
        if fixed_bytes + b * per_image_bytes > budget_bytes:
            return False
        return (b * rows_per_image) % 8 == 0 or b == n
    cands = [b for b in range(1, n + 1) if ok(b)]
    if not cands:
        return n   # whole-batch block: full-extent dims bypass the (8,128) rule
    best = max(cands)
    if n // best < 2:
        two_step = [b for b in cands if n // b >= 2]
        if two_step and 2 * max(two_step) >= best:
            best = max(two_step)
    return best


# ----------------------------- Pallas kernels ------------------------------ #

def _relu_conv3x3_kernel(x_ref, w_ref, b_ref, o_ref, pad_ref):
    """ReLU -> 3x3 'same' conv (stride 1) -> bias for a block of B images.

    x:   (B, H, W, Cin)     input dtype
    w:   (9*Cin, Cout)      bf16, (kh, kw, cin) contraction order
    b:   (1, Cout)          f32
    o:   (B*H*W, Cout)      flat output rows
    pad: (B, H+2, W+2, Cin) f32 scratch, persistent across grid steps.
    """
    B, H, W, C = x_ref.shape

    # Zero only the four 1-wide border strips (interior is fully overwritten below;
    # this is safe under megacore grid sharding, unlike a program_id==0 one-shot init).
    pad_ref[:, 0:1, :, :] = jnp.zeros((B, 1, W + 2, C), jnp.float32)
    pad_ref[:, H + 1:H + 2, :, :] = jnp.zeros((B, 1, W + 2, C), jnp.float32)
    pad_ref[:, :, 0:1, :] = jnp.zeros((B, H + 2, 1, C), jnp.float32)
    pad_ref[:, :, W + 1:W + 2, :] = jnp.zeros((B, H + 2, 1, C), jnp.float32)

    # ReLU + 'same' zero padding: write the interior of the padded scratch.
    pad_ref[:, 1:H + 1, 1:W + 1, :] = jnp.maximum(x_ref[...].astype(jnp.float32), 0.0)

    # im2col in bf16: lane-concat the 9 shifted taps -> (B*H*W, 9*Cin).
    xp = pad_ref[...].astype(_COMPUTE_DTYPE)
    taps = [xp[:, kh:kh + H, kw:kw + W, :] for kh in range(3) for kw in range(3)]
    patches = jnp.concatenate(taps, axis=-1).reshape(B * H * W, 9 * C)

    # Single MXU matmul, contraction depth K = 9*Cin, f32 accumulation, bias fused.
    out = jnp.dot(patches, w_ref[...], preferred_element_type=jnp.float32) + b_ref[...]
    # pseudoBatchNorm: identity pass-through (see TODO at top of file).
    o_ref[...] = out.astype(o_ref.dtype)


def _relu_conv1x1_kernel(x_ref, w_ref, b_ref, o_ref):
    """ReLU -> 1x1 conv -> bias.  x: (M, Cin) flat rows; w: (Cin, Cout) bf16; b: (1, Cout)."""
    x = jnp.maximum(x_ref[...].astype(jnp.float32), 0.0).astype(_COMPUTE_DTYPE)
    out = jnp.dot(x, w_ref[...], preferred_element_type=jnp.float32) + b_ref[...]
    # pseudoBatchNorm: identity pass-through (see TODO at top of file).
    o_ref[...] = out.astype(o_ref.dtype)


def _avgpool3_kernel(W, C, x_ref, o_ref, pad_ref):
    """AvgPool2d(3, stride=1, padding=1), count_include_pad=True, lane-dense & separable.

    x/o: (B, H, W*C) lane-dense blocks; pad: (B, H+2, (W+2)*C) f32 scratch.
    """
    B, H, WC = x_ref.shape
    L = (W + 2) * C

    # Border strips only (interior overwritten each step).
    pad_ref[:, 0:1, :] = jnp.zeros((B, 1, L), jnp.float32)
    pad_ref[:, H + 1:H + 2, :] = jnp.zeros((B, 1, L), jnp.float32)
    pad_ref[:, :, 0:C] = jnp.zeros((B, H + 2, C), jnp.float32)
    pad_ref[:, :, (W + 1) * C:] = jnp.zeros((B, H + 2, C), jnp.float32)
    pad_ref[:, 1:H + 1, C:C + WC] = x_ref[...].astype(jnp.float32)

    xp = pad_ref[...]                                              # (B, H+2, (W+2)*C)
    rows = xp[:, 0:H, :] + xp[:, 1:H + 1, :] + xp[:, 2:H + 2, :]   # 3 sublane-sliced row adds
    # Column taps: lane-offset slices (lower to XLU lane-rotates, same as pltpu.roll
    # by kw*C) + full-width VPU adds.
    s = rows[:, :, 0:WC] + rows[:, :, C:C + WC] + rows[:, :, 2 * C:2 * C + WC]
    o_ref[...] = (s * (1.0 / 9.0)).astype(o_ref.dtype)


# ------------------------------ call helpers ------------------------------- #

def _conv3x3_pallas_call(x, w2, b, block_b, vmem_limit):
    """x: (N,H,W,C) NHWC; w2: (9C, Cout) bf16; b: (1, Cout) f32 -> (N*H*W, Cout)."""
    N, H, W, C = x.shape
    Cout = w2.shape[1]
    cost = pl.CostEstimate(
        flops=2 * N * H * W * Cout * 9 * C,
        transcendentals=0,
        bytes_accessed=int(x.size * x.dtype.itemsize + w2.size * 2 + b.size * 4
                           + N * H * W * Cout * x.dtype.itemsize),
    )
    return pl.pallas_call(
        _relu_conv3x3_kernel,
        out_shape=jax.ShapeDtypeStruct((N * H * W, Cout), x.dtype),
        grid_spec=pltpu.PrefetchScalarGridSpec(
            num_scalar_prefetch=0,
            grid=(N // block_b,),
            in_specs=[pl.BlockSpec((block_b, H, W, C), lambda n: (n, 0, 0, 0)),
                      pl.BlockSpec((9 * C, Cout), lambda n: (0, 0)),
                      pl.BlockSpec((1, Cout), lambda n: (0, 0))],
            out_specs=pl.BlockSpec((block_b * H * W, Cout), lambda n: (n, 0)),
            scratch_shapes=[pltpu.VMEM((block_b, H + 2, W + 2, C), jnp.float32)]),
        compiler_params=pltpu.CompilerParams(dimension_semantics=("parallel",),
                                             vmem_limit_bytes=vmem_limit),
        cost_estimate=cost,
    )(x, w2, b)


def _conv1x1_pallas_call(x_flat, w2, b, block_rows, n_blocks, vmem_limit):
    """x_flat: (N*H*W, C); w2: (C, Cout) bf16; b: (1, Cout) f32 -> (N*H*W, Cout)."""
    M, C = x_flat.shape
    Cout = w2.shape[1]
    cost = pl.CostEstimate(
        flops=2 * M * C * Cout,
        transcendentals=0,
        bytes_accessed=int(M * C * x_flat.dtype.itemsize + w2.size * 2 + b.size * 4
                           + M * Cout * x_flat.dtype.itemsize),
    )
    return pl.pallas_call(
        _relu_conv1x1_kernel,
        out_shape=jax.ShapeDtypeStruct((M, Cout), x_flat.dtype),
        grid_spec=pltpu.PrefetchScalarGridSpec(
            num_scalar_prefetch=0,
            grid=(n_blocks,),
            in_specs=[pl.BlockSpec((block_rows, C), lambda n: (n, 0)),
                      pl.BlockSpec((C, Cout), lambda n: (0, 0)),
                      pl.BlockSpec((1, Cout), lambda n: (0, 0))],
            out_specs=pl.BlockSpec((block_rows, Cout), lambda n: (n, 0))),
        compiler_params=pltpu.CompilerParams(dimension_semantics=("parallel",),
                                             vmem_limit_bytes=vmem_limit),
        cost_estimate=cost,
    )(x_flat, w2, b)


def _conv_forward(x, w, b, k):
    """ReLU -> Conv2d(C, Cout, k, 1, 'same', bias) on NHWC x.  w: (k,k,Cin,Cout)."""
    N, H, W, C = x.shape
    Cout = w.shape[-1]
    w2 = w.reshape(k * k * C, Cout).astype(_COMPUTE_DTYPE)   # (kh, kw, cin) order, host side
    b2 = b.reshape(1, Cout).astype(jnp.float32)
    budget, vmem_limit = _vmem_budgets()

    if k == 3:
        per_image = (2 * H * W * C * 4                  # double-buffered input block
                     + 2 * H * W * Cout * 4             # double-buffered output block
                     + (H + 2) * (W + 2) * C * 4        # padded f32 scratch
                     + 2 * H * W * 9 * C * 2            # bf16 im2col slab + concat temps
                     + H * W * Cout * 4)                # f32 matmul accumulator
        fixed = 2 * (w2.size * 2 + Cout * 4)
        blk_b = _pick_block_batch(N, per_image, fixed, budget, rows_per_image=H * W)
        y = _conv3x3_pallas_call(x, w2, b2, blk_b, vmem_limit)
    else:
        per_image = (2 * H * W * C * 4 + 2 * H * W * Cout * 4
                     + H * W * C * 2 + H * W * Cout * 4)
        fixed = 2 * (w2.size * 2 + Cout * 4)
        blk_b = _pick_block_batch(N, per_image, fixed, budget, rows_per_image=H * W)
        x_flat = x.reshape(N * H * W, C)                # free row-major metadata reshape
        y = _conv1x1_pallas_call(x_flat, w2, b2, blk_b * H * W, N // blk_b, vmem_limit)
    return y.reshape(N, H, W, Cout)                     # free metadata reshape


def _avgpool_forward(x):
    N, H, W, C = x.shape
    budget, vmem_limit = _vmem_budgets()
    per_image = (4 * H * W * C * 4                      # double-buffered in + out blocks
                 + (H + 2) * (W + 2) * C * 4            # padded f32 scratch
                 + 2 * H * (W + 2) * C * 4)             # row/column sum temporaries
    blk_b = _pick_block_batch(N, per_image, 0, budget, rows_per_image=8)
    x_ld = x.reshape(N, H, W * C)                       # free reshape -> lane-dense blocks
    cost = pl.CostEstimate(flops=9 * N * H * W * C, transcendentals=0,
                           bytes_accessed=int(2 * x.size * x.dtype.itemsize))
    y = pl.pallas_call(
        functools.partial(_avgpool3_kernel, W, C),
        out_shape=jax.ShapeDtypeStruct((N, H, W * C), x.dtype),
        grid_spec=pltpu.PrefetchScalarGridSpec(
            num_scalar_prefetch=0,
            grid=(N // blk_b,),
            in_specs=[pl.BlockSpec((blk_b, H, W * C), lambda n: (n, 0, 0))],
            out_specs=pl.BlockSpec((blk_b, H, W * C), lambda n: (n, 0, 0)),
            scratch_shapes=[pltpu.VMEM((blk_b, H + 2, (W + 2) * C), jnp.float32)]),
        compiler_params=pltpu.CompilerParams(dimension_semantics=("parallel",),
                                             vmem_limit_bytes=vmem_limit),
        cost_estimate=cost,
    )(x_ld)
    return y.reshape(N, H, W, C)


# --------------------------- NB201 operator wrapper ------------------------ #

def init_conv_params(key, n_features, k):
    """Deterministic Conv2d(n_features, n_features, k, bias=True) parameters."""
    kw_key, kb_key = jax.random.split(key)
    fan_in = n_features * k * k
    bound = 1.0 / np.sqrt(fan_in)
    # PyTorch layout (Cout, Cin, KH, KW) -> kernel layout (KH, KW, Cin, Cout)
    w_pt = jax.random.uniform(kw_key, (n_features, n_features, k, k),
                              jnp.float32, -bound, bound)
    w = jnp.transpose(w_pt, (2, 3, 1, 0))
    b = jax.random.uniform(kb_key, (1, n_features), jnp.float32, -bound, bound)
    return w, b


def nb201_operator(x, operator_type, n_features, params=None, data_format='NCHW'):
    """Forward of NB201_Operator.

    x: (N, C, H, W) if data_format == 'NCHW' (PyTorch convention), else NHWC.
    Pass data_format='NHWC' from a channels-last network to skip the two per-op
    layout transposes entirely (the op is HBM-bound; transposes ~3x HBM bytes).
    """
    if operator_type == 'skip_connect':
        return x                       # nn.Identity: no kernel, no HBM copy.
    if operator_type == 'none':
        return x * 0                   # Zeroize: keeps NaN propagation; single cheap XLA op.

    if data_format == 'NCHW':
        assert x.shape[1] == n_features
        xh = jnp.transpose(x, (0, 2, 3, 1))     # NCHW -> NHWC
    else:
        assert x.shape[-1] == n_features
        xh = x

    if operator_type in ('nor_conv_3x3', 'nor_conv_1x1'):
        assert n_features in (16, 32, 64)
        k = 3 if operator_type == 'nor_conv_3x3' else 1
        w, b = params
        y = _conv_forward(xh, w, b, k)
    elif operator_type == 'avg_pool_3x3':
        y = _avgpool_forward(xh)
    else:
        raise ValueError(f'unknown operator_type {operator_type!r}')

    if data_format == 'NCHW':
        y = jnp.transpose(y, (0, 3, 1, 2))      # NHWC -> NCHW
    return y


# ----------------------------- reference checks ----------------------------- #

def _conv_reference(x_nchw, w_khwcico, b, k):
    """Pure-JAX f32 reference: ReLU -> 'same' conv -> bias (NCHW in/out)."""
    x = jnp.maximum(x_nchw, 0.0)
    w_oihw = jnp.transpose(w_khwcico, (3, 2, 0, 1))   # (KH,KW,Cin,Cout)->(Cout,Cin,KH,KW)
    y = jax.lax.conv_general_dilated(
        x, w_oihw, window_strides=(1, 1), padding='SAME',
        dimension_numbers=('NCHW', 'OIHW', 'NCHW'))
    return y + b.reshape(1, -1, 1, 1)


def _avgpool_reference(x_nchw):
    xp = jnp.pad(x_nchw, ((0, 0), (0, 0), (1, 1), (1, 1)))
    s = jax.lax.reduce_window(xp, 0.0, jax.lax.add, (1, 1, 3, 3), (1, 1, 1, 1), 'VALID')
    return s / 9.0


# ----------------------------------- main ----------------------------------- #

if __name__ == '__main__':
    key = jax.random.PRNGKey(0)
    k_x, k_x2, k_w3, k_w1 = jax.random.split(key, 4)

    n_features = 16
    # N=8 so the batched grid actually runs multiple images per block (B>1, >=2 steps).
    x = jax.random.normal(k_x, (8, n_features, 8, 8), jnp.float32)        # NCHW
    x_odd = jax.random.normal(k_x2, (8, n_features, 8, 6), jnp.float32)   # odd W*C path

    params3 = init_conv_params(k_w3, n_features, 3)
    params1 = init_conv_params(k_w1, n_features, 1)

    outs = {
        'nor_conv_3x3': nb201_operator(x, 'nor_conv_3x3', n_features, params3),
        'nor_conv_1x1': nb201_operator(x, 'nor_conv_1x1', n_features, params1),
        'avg_pool_3x3': nb201_operator(x, 'avg_pool_3x3', n_features),
        'skip_connect': nb201_operator(x, 'skip_connect', n_features),
        'none':         nb201_operator(x, 'none', n_features),
        'nor_conv_3x3_odd': nb201_operator(x_odd, 'nor_conv_3x3', n_features, params3),
        'avg_pool_3x3_odd': nb201_operator(x_odd, 'avg_pool_3x3', n_features),
    }
    for v in outs.values():
        jax.block_until_ready(v)

    # Correctness checks.  Convs use bf16 MXU inputs with f32 accumulation, so compare
    # against the f32 reference with a bf16-appropriate tolerance; pool is exact f32.
    np.testing.assert_allclose(outs['nor_conv_3x3'],
                               _conv_reference(x, *params3, 3), rtol=2e-2, atol=2e-2)
    np.testing.assert_allclose(outs['nor_conv_1x1'],
                               _conv_reference(x, *params1, 1), rtol=2e-2, atol=2e-2)
    np.testing.assert_allclose(outs['avg_pool_3x3'], _avgpool_reference(x),
                               rtol=1e-3, atol=1e-3)
    np.testing.assert_allclose(outs['skip_connect'], x, rtol=0, atol=0)
    np.testing.assert_allclose(outs['none'], jnp.zeros_like(x), rtol=0, atol=0)
    np.testing.assert_allclose(outs['nor_conv_3x3_odd'],
                               _conv_reference(x_odd, *params3, 3), rtol=2e-2, atol=2e-2)
    np.testing.assert_allclose(outs['avg_pool_3x3_odd'], _avgpool_reference(x_odd),
                               rtol=1e-3, atol=1e-3)

    print("KERNEL_OK")
</pallas_src>

<mosaic_0001>
module attributes {stable_mosaic.version = 11 : i64} {
  func.func @_relu_conv3x3_kernel(%arg0: i32, %arg1: memref<4x8x8x16xf32, #tpu.memory_space<vmem>>, %arg2: memref<144x16xbf16, #tpu.memory_space<vmem>>, %arg3: memref<1x16xf32, #tpu.memory_space<vmem>>, %arg4: memref<256x16xf32, #tpu.memory_space<vmem>>, %arg5: memref<4x10x10x16xf32, #tpu.memory_space<vmem>>) attributes {dimension_semantics = [#tpu.dimension_semantics<parallel>], iteration_bounds = array<i64: 2>, scalar_prefetch = 0 : i64, scratch_operands = 1 : i64, tpu.core_type = #tpu.core_type<tc>, window_params = [{transform_indices = @transform_0, window_bounds = array<i64: 4, 8, 8, 16>}, {pipeline_mode = #tpu.pipeline_mode<synchronous>, transform_indices = @transform_1, window_bounds = array<i64: 144, 16>}, {pipeline_mode = #tpu.pipeline_mode<synchronous>, transform_indices = @transform_2, window_bounds = array<i64: 1, 16>}, {transform_indices = @transform_3, window_bounds = array<i64: 256, 16>}]} {
    %cst = arith.constant 0.000000e+00 : f32
    %0 = vector.broadcast %cst : f32 to vector<4x1x10x16xf32>
    %c0 = arith.constant 0 : index
    %c0_0 = arith.constant 0 : index
    %c0_1 = arith.constant 0 : index
    %c0_2 = arith.constant 0 : index
    %1 = vector.load %arg5[%c0, %c0_0, %c0_1, %c0_2] : memref<4x10x10x16xf32, #tpu.memory_space<vmem>>, vector<4x1x10x16xf32>
    tpu.vector_store %arg5[%c0, %c0_0, %c0_1, %c0_2], %0 {strides = array<i32>} : memref<4x10x10x16xf32, #tpu.memory_space<vmem>>, vector<4x1x10x16xf32>,
    %cst_3 = arith.constant 0.000000e+00 : f32
    %2 = vector.broadcast %cst_3 : f32 to vector<4x1x10x16xf32>
    %c0_4 = arith.constant 0 : index
    %c9 = arith.constant 9 : index
    %c0_5 = arith.constant 0 : index
    %c0_6 = arith.constant 0 : index
    %3 = vector.load %arg5[%c0_4, %c9, %c0_5, %c0_6] : memref<4x10x10x16xf32, #tpu.memory_space<vmem>>, vector<4x1x10x16xf32>
    tpu.vector_store %arg5[%c0_4, %c9, %c0_5, %c0_6], %2 {strides = array<i32>} : memref<4x10x10x16xf32, #tpu.memory_space<vmem>>, vector<4x1x10x16xf32>,
    %cst_7 = arith.constant 0.000000e+00 : f32
    %4 = vector.broadcast %cst_7 : f32 to vector<4x10x1x16xf32>
    %c0_8 = arith.constant 0 : index
    %c0_9 = arith.constant 0 : index
    %c0_10 = arith.constant 0 : index
    %c0_11 = arith.constant 0 : index
    %5 = vector.load %arg5[%c0_8, %c0_9, %c0_10, %c0_11] : memref<4x10x10x16xf32, #tpu.memory_space<vmem>>, vector<4x10x1x16xf32>
    tpu.vector_store %arg5[%c0_8, %c0_9, %c0_10, %c0_11], %4 {strides = array<i32>} : memref<4x10x10x16xf32, #tpu.memory_space<vmem>>, vector<4x10x1x16xf32>,
    %cst_12 = arith.constant 0.000000e+00 : f32
    %6 = vector.broadcast %cst_12 : f32 to vector<4x10x1x16xf32>
    %c0_13 = arith.constant 0 : index
    %c0_14 = arith.constant 0 : index
    %c9_15 = arith.constant 9 : index
    %c0_16 = arith.constant 0 : index
    %7 = vector.load %arg5[%c0_13, %c0_14, %c9_15, %c0_16] : memref<4x10x10x16xf32, #tpu.memory_space<vmem>>, vector<4x10x1x16xf32>
    tpu.vector_store %arg5[%c0_13, %c0_14, %c9_15, %c0_16], %6 {strides = array<i32>} : memref<4x10x10x16xf32, #tpu.memory_space<vmem>>, vector<4x10x1x16xf32>,
    %c0_17 = arith.constant 0 : index
    %c0_18 = arith.constant 0 : index
    %c0_19 = arith.constant 0 : index
    %c0_20 = arith.constant 0 : index
    %8 = vector.load %arg1[%c0_17, %c0_18, %c0_19, %c0_20] : memref<4x8x8x16xf32, #tpu.memory_space<vmem>>, vector<4x8x8x16xf32>
    %cst_21 = arith.constant 0.000000e+00 : f32
    %9 = vector.broadcast %cst_21 : f32 to vector<4x8x8x16xf32>
    %10 = arith.maximumf %8, %9 : vector<4x8x8x16xf32>
    %c0_22 = arith.constant 0 : index
    %c1 = arith.constant 1 : index
    %c1_23 = arith.constant 1 : index
    %c0_24 = arith.constant 0 : index
    %11 = vector.load %arg5[%c0_22, %c1, %c1_23, %c0_24] : memref<4x10x10x16xf32, #tpu.memory_space<vmem>>, vector<4x8x8x16xf32>
    tpu.vector_store %arg5[%c0_22, %c1, %c1_23, %c0_24], %10 {strides = array<i32>} : memref<4x10x10x16xf32, #tpu.memory_space<vmem>>, vector<4x8x8x16xf32>,
    %c0_25 = arith.constant 0 : index
    %c0_26 = arith.constant 0 : index
    %c0_27 = arith.constant 0 : index
    %c0_28 = arith.constant 0 : index
    %12 = vector.load %arg5[%c0_25, %c0_26, %c0_27, %c0_28] : memref<4x10x10x16xf32, #tpu.memory_space<vmem>>, vector<4x10x10x16xf32>
    %13 = arith.truncf %12 : vector<4x10x10x16xf32> to vector<4x10x10x16xbf16>
    %14 = vector.extract_strided_slice %13 {offsets = [0, 0, 0, 0], sizes = [4, 8, 8, 16], strides = [1, 1, 1, 1]} : vector<4x10x10x16xbf16> to vector<4x8x8x16xbf16>
    %15 = vector.extract_strided_slice %13 {offsets = [0, 0, 1, 0], sizes = [4, 8, 8, 16], strides = [1, 1, 1, 1]} : vector<4x10x10x16xbf16> to vector<4x8x8x16xbf16>
    %16 = vector.extract_strided_slice %13 {offsets = [0, 0, 2, 0], sizes = [4, 8, 8, 16], strides = [1, 1, 1, 1]} : vector<4x10x10x16xbf16> to vector<4x8x8x16xbf16>
    %17 = vector.extract_strided_slice %13 {offsets = [0, 1, 0, 0], sizes = [4, 8, 8, 16], strides = [1, 1, 1, 1]} : vector<4x10x10x16xbf16> to vector<4x8x8x16xbf16>
    %18 = vector.extract_strided_slice %13 {offsets = [0, 1, 1, 0], sizes = [4, 8, 8, 16], strides = [1, 1, 1, 1]} : vector<4x10x10x16xbf16> to vector<4x8x8x16xbf16>
    %19 = vector.extract_strided_slice %13 {offsets = [0, 1, 2, 0], sizes = [4, 8, 8, 16], strides = [1, 1, 1, 1]} : vector<4x10x10x16xbf16> to vector<4x8x8x16xbf16>
    %20 = vector.extract_strided_slice %13 {offsets = [0, 2, 0, 0], sizes = [4, 8, 8, 16], strides = [1, 1, 1, 1]} : vector<4x10x10x16xbf16> to vector<4x8x8x16xbf16>
    %21 = vector.extract_strided_slice %13 {offsets = [0, 2, 1, 0], sizes = [4, 8, 8, 16], strides = [1, 1, 1, 1]} : vector<4x10x10x16xbf16> to vector<4x8x8x16xbf16>
    %22 = vector.extract_strided_slice %13 {offsets = [0, 2, 2, 0], sizes = [4, 8, 8, 16], strides = [1, 1, 1, 1]} : vector<4x10x10x16xbf16> to vector<4x8x8x16xbf16>
    %23 = tpu.concatenate %14, %15, %16, %17, %18, %19, %20, %21, %22 in 3 : vector<4x8x8x16xbf16>, vector<4x8x8x16xbf16>, vector<4x8x8x16xbf16>, vector<4x8x8x16xbf16>, vector<4x8x8x16xbf16>, vector<4x8x8x16xbf16>, vector<4x8x8x16xbf16>, vector<4x8x8x16xbf16>, vector<4x8x8x16xbf16> -> vector<4x8x8x144xbf16>
    %24 = vector.shape_cast %23 : vector<4x8x8x144xbf16> to vector<256x144xbf16>
    %c0_29 = arith.constant 0 : index
    %c0_30 = arith.constant 0 : index
    %25 = vector.load %arg2[%c0_29, %c0_30] : memref<144x16xbf16, #tpu.memory_space<vmem>>, vector<144x16xbf16>
    %cst_31 = arith.constant dense<0.000000e+00> : vector<256x16xf32>
    %26 = tpu.matmul %24, %25, %cst_31 {dimension_numbers = #tpu.dot_dimension_numbers<[1], [0], [0], [1], [0, 0, 1, 1], [], []>} : vector<256x144xbf16>, vector<144x16xbf16>, vector<256x16xf32> -> vector<256x16xf32>
    %c0_32 = arith.constant 0 : index
    %c0_33 = arith.constant 0 : index
    %27 = vector.load %arg3[%c0_32, %c0_33] : memref<1x16xf32, #tpu.memory_space<vmem>>, vector<1x16xf32>
    %28 = vector.broadcast %27 : vector<1x16xf32> to vector<256x16xf32>
    %29 = arith.addf %26, %28 : vector<256x16xf32>
    %c0_34 = arith.constant 0 : index
    %c0_35 = arith.constant 0 : index
    %30 = vector.load %arg4[%c0_34, %c0_35] : memref<256x16xf32, #tpu.memory_space<vmem>>, vector<256x16xf32>
    tpu.vector_store %arg4[%c0_34, %c0_35], %29 {strides = array<i32>} : memref<256x16xf32, #tpu.memory_space<vmem>>, vector<256x16xf32>,
    return
  }
  func.func @transform_0(%arg0: i32) -> (i32, i32, i32, i32) {
    %c0_i32 = arith.constant 0 : i32
    %c0_i32_0 = arith.constant 0 : i32
    %c0_i32_1 = arith.constant 0 : i32
    %c0_i32_2 = arith.constant 0 : i32
    return %arg0, %c0_i32, %c0_i32_0, %c0_i32_1 : i32, i32, i32, i32
  }
  func.func @transform_1(%arg0: i32) -> (i32, i32) {
    %c0_i32 = arith.constant 0 : i32
    %c0_i32_0 = arith.constant 0 : i32
    %c0_i32_1 = arith.constant 0 : i32
    return %c0_i32, %c0_i32_0 : i32, i32
  }
  func.func @transform_2(%arg0: i32) -> (i32, i32) {
    %c0_i32 = arith.constant 0 : i32
    %c0_i32_0 = arith.constant 0 : i32
    %c0_i32_1 = arith.constant 0 : i32
    return %c0_i32, %c0_i32_0 : i32, i32
  }
  func.func @transform_3(%arg0: i32) -> (i32, i32) {
    %c0_i32 = arith.constant 0 : i32
    %c0_i32_0 = arith.constant 0 : i32
    return %arg0, %c0_i32 : i32, i32
  }
}

</mosaic_0001>

<bundles_post_ra>
// kernel: tpu_custom_call.1
= control target key start
LH: loop header
LB: loop body
LE: loop exit
PB: predicated region body
PF: predicated region fallthrough
CT: control target
= control target key end

     0   :  { %8 = vsyncpa [#allocation4], 0  ;;  %s4352_s0 = inlined_call_operand.hbm [shape: f32[8,8,8,16], index: 0, kind: input, shape index: {}]   ;;  %s4353_s1 = inlined_call_operand.vmem [shape: bf16[144,16], index: 1, kind: input, shape index: {}]   ;;  %s4354_s2 = inlined_call_operand.vmem [shape: f32[1,16], index: 2, kind: input, shape index: {}]   ;;  %s4355_s3 = inlined_call_operand.vmem [shape: f32[512,16], index: 3, kind: output, shape index: {}]  }
   0x1   :  { %10 = vsyncpa [#allocation4 + $0x1], 0  ;;  %s2554_s12 = smov 0   ;;  %s2556_s13 = smov 0  }
   0x2   :  { %s2558_s14 = smov 0   ;;  %s2560_s15 = smov 0  }
   0x3 LB: > { %s2305_s16 = sadd.s32 4294967295, %s2520_s15   ;;  %s2574_s17 = sadd.s32 1, %s2520_s15   ;;  %s2520_s15 = sphi %s2560_s15, %s4606_s15   ;;  %s2516_s14 = sphi %s2558_s14, %s4605_s14   ;;  %s2512_s13 = sphi %s2556_s13, %s4604_s13   ;;  %s2508_s12 = sphi %s2554_s12, %s4603_s12  }
   0x4   : > { %s20_s18 = ssub.s32 %s2520_s15, %s2574_s17  ;;  %s23_s19 = sadd.s32 1, %s2516_s14 }
   0x5   : > { %p21_p0 = scmp.eq.s32.totalorder %s20_s18, 0  ;;  %p30_p1 = scmp.ne.s32.totalorder %s2516_s14, %s2512_s13 }
   0x6   : > { %p31_p2 = scmp.eq.s32.totalorder %s2520_s15, 0  ;;  %p36_p3 = scmp.ne.s32.totalorder %s2512_s13, %s2508_s12 }
   0x7   : > { %s2584_s20 = scalar_select %p21_p0, %s2516_s14, %s23_s19  }
   0x8   : > { %p32_p4 = por %p31_p2, %p30_p1  ;;  %p37_p5 = scmp.eq.s32.totalorder %s2305_s16, 0 }
   0x9   : > { %p2403_p6 = scmp.lt.s32.totalorder %s2520_s15, 2  ;;  %s134_s22 = sand.u32 1, %s2516_s14  }
   0xa   : > { %p2589_p7 = por %p37_p5, %p36_p3  ;;  %s2309_s23 = sshll.u32 %s134_s22, 8 }
   0xb   : > { %s2378_s24 = sshll.u32 %s2520_s15, 12  ;;  %s138_s28 = scalar_lea.vmem [#allocation3], %s2309_s23 }
   0xc   : > { %s2598_s27 = scalar_lea.hbm %s4352_s0, %s2378_s24  ;;  %s146_s29 = sshll.u32 %s138_s28, 4  ;;  %s2600_s29 = int_to_ptr.vmem [resolvable:$true] %s146_s29 }
   0xd   : > { %p2602_p8 = pnand %p2403_p6, %p32_p4  ;;  %s2607_s4 = scalar_lea.sflag [#allocation4], %s134_s22 }
   0xe   : > { %s2456_s5 = scalar_lea.hbm %s2598_s27, 4096  ;;  %s2461_s8 = scalar_lea.hbm %s4352_s0, 8192 }
   0xf   : > { %p2457_p10 = scmp.ne.s32.totalorder %s2598_s27, %s2456_s5  ;;  %p2458_p11 = pneg %p2602_p8 }
  0x10   : > { %p2462_p0 = scmp.lt.u32.totalorder %s2598_s27, %s4352_s0  ;;  %p2463_p1 = scmp.lt.u32.totalorder %s2461_s8, %s2456_s5 }
  0x11   : > { %p2459_p12 = pnand %p2458_p11, %p2457_p10  ;;  %p2465_p3 = scmp.lt.u32.totalorder %s2456_s5, %s2598_s27 }
  0x12   : > { %p2464_p2 = por %p2463_p1, %p2462_p0 }
  0x13   : > { %p2460_p13 = pneg %p2459_p12 }
  0x14   : > { %p2466_p4 = por %p2465_p3, %p2464_p2 }
  0x16   : > { %p2467_p5 = pnand %p2466_p4, %p2460_p13 }
  0x18   : > { %2470 = shalt.err (!%p2467_p5)
}
  0x19   : > { %s2471_s11 = scalar_lea.vmem %s2600_s29, 4096  ;;  %s2522_s12 = smov [#allocation3]  }
  0x1a   : > { %p2472_p6 = scmp.ne.s32.totalorder %s2600_s29, %s2471_s11  ;;  %s2476_s18 = sshll.u32 %s2522_s12, 4  ;;  %s2477_s18 = int_to_ptr.vmem [resolvable:$false] %s2476_s18 }
  0x1b   : > { %s2478_s19 = scalar_lea.vmem %s2477_s18, 8192  ;;  %p2479_p9 = scmp.lt.s32.totalorder %s2600_s29, %s2477_s18 }
  0x1c   : > { %p2474_p10 = pnand %p2472_p6, %p2458_p11  ;;  %p2480_p0 = scmp.lt.s32.totalorder %s2478_s19, %s2471_s11 }
  0x1e   : > { %p2475_p12 = pneg %p2474_p10  ;;  %p2481_p1 = por %p2480_p0, %p2479_p9 }
  0x20   : > { %p2482_p2 = pnand %p2481_p1, %p2475_p12 }
  0x22   : > { %2485 = shalt.err (!%p2482_p2)
}
  0x23   : > { %s2523_s22 = smov 128   ;;  %s2524_s23 = smov 8  }
  0x24   : > { %2402 = dma.hbm_to_vmem [thread:$0]  (!%p2602_p8), %s2598_s27, 4096, %s2600_s29, %s2607_s4, %s2523_s22, %s2523_s22, %s2524_s23  }
  0x25   : > { %p154_p11 = scmp.lt.s32.totalorder %s2520_s15, 3  ;;  %p4431_p13 = scmp.ge.s32.totalorder %s2520_s15, 1 }
  0x27   : > { %p155_p3 = pnand %p4431_p13, %p154_p11 }
  0x29   : > { %158 = sbr.rel (%p155_p3) target bundleno = 896 (0x380), region = 32 }
  0x30   : > { %s160_s24 = sand.u32 1, %s2512_s13  }
  0x31   : > { %s2314_s25 = sshll.u32 %s160_s24, 8  ;;  %s161_s26 = scalar_lea.sflag [#allocation4], %s160_s24 }
  0x32   : > { %s2639_s28 = scalar_lea.vmem [#allocation3], %s2314_s25 }
  0x33   : > { %2503 = dma.done.wait (%p2589_p7), %s161_s26, 4096  }
  0x34   : > { %2505 = vsyncadd (%p2589_p7), %s161_s26, 4294963200  ;;  %vm195_vm0 = vcmask 130048   ;;  %vm197_vm1 = vcmask 123904   ;;  %vm214_vm2 = vcmask 122880   ;;  %v2525_v0 = vmov 0.0   ;;  %v296_v1 = vld [vmem:[%s2639_s28 + $0x8] sm:$0xff] }
  0x35   : > { %196 = vst.msk [vmem:[#allocation2] sm:$0xff] %vm195_vm0, %v2525_v0  ;;  %199 = vst.msk [vmem:[#allocation2 + $0xa0] sm:$0xff] %vm195_vm0, %v2525_v0  ;;  %v295_v2 = vld [vmem:[%s2639_s28] sm:$0xff]  ;;  %v297_v3 = vld [vmem:[%s2639_s28 + $0x10] sm:$0xff]  ;;  %v328_v4 = vmax.f32 %v296_v1, 0.0  ;;  %s2526_s21 = smov 16  }
  0x36   : > { %198 = vst.msk [vmem:[#allocation2 + $0x8] sm:$0x3] %vm197_vm1, %v2525_v0  ;;  %200 = vst.msk [vmem:[#allocation2 + $0xa8] sm:$0x3] %vm197_vm1, %v2525_v0  ;;  %v327_v5 = vmax.f32 %v295_v2, 0.0  ;;  %v329_v6 = vmax.f32 %v297_v3, 0.0 }
  0x37   : > { %201 = vst.msk [vmem:[#allocation2 + $0x140] sm:$0xff] %vm195_vm0, %v2525_v0  ;;  %203 = vst.msk [vmem:[#allocation2 + $0x1e0] sm:$0xff] %vm195_vm0, %v2525_v0  ;;  %v298_v7 = vld [vmem:[%s2639_s28 + $0x18] sm:$0xff]  ;;  %v299_v8 = vld [vmem:[%s2639_s28 + $0x20] sm:$0xff]  ;;  %s2527_s27 = smov 32   ;;  %s2529_s6 = smov 48  }
  0x38   : > { %202 = vst.msk [vmem:[#allocation2 + $0x148] sm:$0x3] %vm197_vm1, %v2525_v0  ;;  %204 = vst.msk [vmem:[#allocation2 + $0x1e8] sm:$0x3] %vm197_vm1, %v2525_v0  ;;  %v300_v9 = vld [vmem:[%s2639_s28 + $0x28] sm:$0xff]  ;;  %v330_v13 = vmax.f32 %v298_v7, 0.0 }
  0x39   : > { %206 = vst.msk [vmem:[#allocation2 + $0x90] sm:$0xff] %vm195_vm0, %v2525_v0  ;;  %208 = vst.msk [vmem:[#allocation2 + $0x130] sm:$0xff] %vm195_vm0, %v2525_v0  ;;  %v331_v14 = vmax.f32 %v299_v8, 0.0  ;;  %v332_v17 = vmax.f32 %v300_v9, 0.0  ;;  %v301_v18 = vld [vmem:[%s2639_s28 + $0x30] sm:$0xff]  ;;  %v304_v19 = vld [vmem:[%s2639_s28 + $0x48] sm:$0xff] }
  0x3a   : > { %207 = vst.msk [vmem:[#allocation2 + $0x98] sm:$0x3] %vm197_vm1, %v2525_v0  ;;  %209 = vst.msk [vmem:[#allocation2 + $0x138] sm:$0x3] %vm197_vm1, %v2525_v0  ;;  %v333_v21 = vmax.f32 %v301_v18, 0.0  ;;  %v336_v22 = vmax.f32 %v304_v19, 0.0 }
  0x3b   : > { %210 = vst.msk [vmem:[#allocation2 + $0x1d0] sm:$0xff] %vm195_vm0, %v2525_v0  ;;  %212 = vst.msk [vmem:[#allocation2 + $0x270] sm:$0xff] %vm195_vm0, %v2525_v0  ;;  %v303_v23 = vld [vmem:[%s2639_s28 + $0x40] sm:$0xff]  ;;  %v306_v24 = vld [vmem:[%s2639_s28 + $0x58] sm:$0xff]  ;;  %s2530_s11 = smov 64   ;;  %s2531_s23 = smov 80  }
  0x3c   : > { %211 = vst.msk [vmem:[#allocation2 + $0x1d8] sm:$0x3] %vm197_vm1, %v2525_v0  ;;  %213 = vst.msk [vmem:[#allocation2 + $0x278] sm:$0x3] %vm197_vm1, %v2525_v0  ;;  %v305_v25 = vld [vmem:[%s2639_s28 + $0x50] sm:$0xff]  ;;  %v335_v28 = vmax.f32 %v303_v23, 0.0 }
  0x3d   : > { %216 = vst.msk [vmem:[#allocation2 + $0x10] sm:$0x1] %vm214_vm2, %v2525_v0  ;;  %217 = vst.msk [vmem:[#allocation2 + $0x20] sm:$0x1] %vm214_vm2, %v2525_v0  ;;  %v338_v29 = vmax.f32 %v306_v24, 0.0  ;;  %v308_v30 = vld [vmem:[%s2639_s28 + $0x68] sm:$0xff] }
  0x3e   : > { %218 = vst.msk [vmem:[#allocation2 + $0x30] sm:$0x1] %vm214_vm2, %v2525_v0  ;;  %219 = vst.msk [vmem:[#allocation2 + $0x40] sm:$0x1] %vm214_vm2, %v2525_v0  ;;  %v307_v31 = vld [vmem:[%s2639_s28 + $0x60] sm:$0xff]  ;;  %v337_v33 = vmax.f32 %v305_v25, 0.0 }
  0x3f   : > { %220 = vst.msk [vmem:[#allocation2 + $0x50] sm:$0x1] %vm214_vm2, %v2525_v0  ;;  %221 = vst.msk [vmem:[#allocation2 + $0x60] sm:$0x1] %vm214_vm2, %v2525_v0  ;;  %v340_v34 = vmax.f32 %v308_v30, 0.0  ;;  %v309_v35 = vld [vmem:[%s2639_s28 + $0x70] sm:$0xff] }
  0x40   : > { %222 = vst.msk [vmem:[#allocation2 + $0x70] sm:$0x1] %vm214_vm2, %v2525_v0  ;;  %223 = vst.msk [vmem:[#allocation2 + $0x80] sm:$0x1] %vm214_vm2, %v2525_v0  ;;  %v339_v38 = vmax.f32 %v307_v31, 0.0  ;;  %v341_v39 = vmax.f32 %v309_v35, 0.0 }
  0x41   : > { %226 = vst.msk [vmem:[#allocation2 + $0xb0] sm:$0x1] %vm214_vm2, %v2525_v0  ;;  %227 = vst.msk [vmem:[#allocation2 + $0xc0] sm:$0x1] %vm214_vm2, %v2525_v0  ;;  %v312_v40 = vld [vmem:[%s2639_s28 + $0x88] sm:$0xff]  ;;  %v311_v43 = vld [vmem:[%s2639_s28 + $0x80] sm:$0xff] }
  0x42   : > { %228 = vst.msk [vmem:[#allocation2 + $0xd0] sm:$0x1] %vm214_vm2, %v2525_v0  ;;  %229 = vst.msk [vmem:[#allocation2 + $0xe0] sm:$0x1] %vm214_vm2, %v2525_v0  ;;  %v344_v42 = vmax.f32 %v312_v40, 0.0  ;;  %v314_v44 = vld [vmem:[%s2639_s28 + $0x98] sm:$0xff] }
  0x43   : > { %230 = vst.msk [vmem:[#allocation2 + $0xf0] sm:$0x1] %vm214_vm2, %v2525_v0  ;;  %231 = vst.msk [vmem:[#allocation2 + $0x100] sm:$0x1] %vm214_vm2, %v2525_v0  ;;  %v313_v45 = vld [vmem:[%s2639_s28 + $0x90] sm:$0xff]  ;;  %v343_v47 = vmax.f32 %v311_v43, 0.0 }
  0x44   : > { %232 = vst.msk [vmem:[#allocation2 + $0x110] sm:$0x1] %vm214_vm2, %v2525_v0  ;;  %233 = vst.msk [vmem:[#allocation2 + $0x120] sm:$0x1] %vm214_vm2, %v2525_v0  ;;  %v346_v48 = vmax.f32 %v314_v44, 0.0  ;;  %v345_v49 = vmax.f32 %v313_v45, 0.0 }
  0x45   : > { %236 = vst.msk [vmem:[#allocation2 + $0x150] sm:$0x1] %vm214_vm2, %v2525_v0  ;;  %237 = vst.msk [vmem:[#allocation2 + $0x160] sm:$0x1] %vm214_vm2, %v2525_v0  ;;  %v316_v50 = vld [vmem:[%s2639_s28 + $0xa8] sm:$0xff]  ;;  %v315_v51 = vld [vmem:[%s2639_s28 + $0xa0] sm:$0xff] }
  0x46   : > { %238 = vst.msk [vmem:[#allocation2 + $0x170] sm:$0x1] %vm214_vm2, %v2525_v0  ;;  %239 = vst.msk [vmem:[#allocation2 + $0x180] sm:$0x1] %vm214_vm2, %v2525_v0  ;;  %v348_v60 = vmax.f32 %v316_v50, 0.0  ;;  %s2532_s29 = smov 96  }
  0x47   : > { %240 = vst.msk [vmem:[#allocation2 + $0x190] sm:$0x1] %vm214_vm2, %v2525_v0  ;;  %241 = vst.msk [vmem:[#allocation2 + $0x1a0] sm:$0x1] %vm214_vm2, %v2525_v0  ;;  %s2533_s5 = smov 112   ;;  %vm1384_vm3 = vcmask 261120  }
  0x48   : > { %242 = vst.msk [vmem:[#allocation2 + $0x1b0] sm:$0x1] %vm214_vm2, %v2525_v0  ;;  %243 = vst.msk [vmem:[#allocation2 + $0x1c0] sm:$0x1] %vm214_vm2, %v2525_v0  ;;  %vm1449_vm4 = vcmask 392192   ;;  %vm1514_vm5 = vcmask 523264  }
  0x49   : > { %246 = vst.msk [vmem:[#allocation2 + $0x1f0] sm:$0x1] %vm214_vm2, %v2525_v0  ;;  %247 = vst.msk [vmem:[#allocation2 + $0x200] sm:$0x1] %vm214_vm2, %v2525_v0  ;;  %vm1579_vm6 = vcmask 654336   ;;  %vm1644_vm7 = vcmask 785408  }
  0x4a   : > { %248 = vst.msk [vmem:[#allocation2 + $0x210] sm:$0x1] %vm214_vm2, %v2525_v0  ;;  %249 = vst.msk [vmem:[#allocation2 + $0x220] sm:$0x1] %vm214_vm2, %v2525_v0  ;;  %vm1709_vm8 = vcmask 916480  }
  0x4b   : > { %250 = vst.msk [vmem:[#allocation2 + $0x230] sm:$0x1] %vm214_vm2, %v2525_v0  ;;  %251 = vst.msk [vmem:[#allocation2 + $0x240] sm:$0x1] %vm214_vm2, %v2525_v0 }
  0x4c   : > { %252 = vst.msk [vmem:[#allocation2 + $0x250] sm:$0x1] %vm214_vm2, %v2525_v0  ;;  %253 = vst.msk [vmem:[#allocation2 + $0x260] sm:$0x1] %vm214_vm2, %v2525_v0 }
  0x4d   : > { %256 = vst.msk [vmem:[#allocation2 + $0x19] sm:$0x1] %vm214_vm2, %v2525_v0  ;;  %257 = vst.msk [vmem:[#allocation2 + $0x29] sm:$0x1] %vm214_vm2, %v2525_v0 }
  0x4e   : > { %258 = vst.msk [vmem:[#allocation2 + $0x39] sm:$0x1] %vm214_vm2, %v2525_v0  ;;  %259 = vst.msk [vmem:[#allocation2 + $0x49] sm:$0x1] %vm214_vm2, %v2525_v0 }
  0x4f   : > { %260 = vst.msk [vmem:[#allocation2 + $0x59] sm:$0x1] %vm214_vm2, %v2525_v0  ;;  %261 = vst.msk [vmem:[#allocation2 + $0x69] sm:$0x1] %vm214_vm2, %v2525_v0 }
  0x50   : > { %262 = vst.msk [vmem:[#allocation2 + $0x79] sm:$0x1] %vm214_vm2, %v2525_v0  ;;  %263 = vst.msk [vmem:[#allocation2 + $0x89] sm:$0x1] %vm214_vm2, %v2525_v0 }
  0x51   : > { %266 = vst.msk [vmem:[#allocation2 + $0xb9] sm:$0x1] %vm214_vm2, %v2525_v0  ;;  %267 = vst.msk [vmem:[#allocation2 + $0xc9] sm:$0x1] %vm214_vm2, %v2525_v0 }
  0x52   : > { %268 = vst.msk [vmem:[#allocation2 + $0xd9] sm:$0x1] %vm214_vm2, %v2525_v0  ;;  %269 = vst.msk [vmem:[#allocation2 + $0xe9] sm:$0x1] %vm214_vm2, %v2525_v0 }
  0x53   : > { %270 = vst.msk [vmem:[#allocation2 + $0xf9] sm:$0x1] %vm214_vm2, %v2525_v0  ;;  %271 = vst.msk [vmem:[#allocation2 + $0x109] sm:$0x1] %vm214_vm2, %v2525_v0 }
  0x54   : > { %272 = vst.msk [vmem:[#allocation2 + $0x119] sm:$0x1] %vm214_vm2, %v2525_v0  ;;  %273 = vst.msk [vmem:[#allocation2 + $0x129] sm:$0x1] %vm214_vm2, %v2525_v0 }
  0x55   : > { %276 = vst.msk [vmem:[#allocation2 + $0x159] sm:$0x1] %vm214_vm2, %v2525_v0  ;;  %277 = vst.msk [vmem:[#allocation2 + $0x169] sm:$0x1] %vm214_vm2, %v2525_v0 }
  0x56   : > { %278 = vst.msk [vmem:[#allocation2 + $0x179] sm:$0x1] %vm214_vm2, %v2525_v0  ;;  %279 = vst.msk [vmem:[#allocation2 + $0x189] sm:$0x1] %vm214_vm2, %v2525_v0 }
  0x57   : > { %280 = vst.msk [vmem:[#allocation2 + $0x199] sm:$0x1] %vm214_vm2, %v2525_v0  ;;  %281 = vst.msk [vmem:[#allocation2 + $0x1a9] sm:$0x1] %vm214_vm2, %v2525_v0 }
  0x58   : > { %282 = vst.msk [vmem:[#allocation2 + $0x1b9] sm:$0x1] %vm214_vm2, %v2525_v0  ;;  %283 = vst.msk [vmem:[#allocation2 + $0x1c9] sm:$0x1] %vm214_vm2, %v2525_v0 }
  0x59   : > { %286 = vst.msk [vmem:[#allocation2 + $0x1f9] sm:$0x1] %vm214_vm2, %v2525_v0  ;;  %287 = vst.msk [vmem:[#allocation2 + $0x209] sm:$0x1] %vm214_vm2, %v2525_v0 }
  0x5a   : > { %288 = vst.msk [vmem:[#allocation2 + $0x219] sm:$0x1] %vm214_vm2, %v2525_v0  ;;  %289 = vst.msk [vmem:[#allocation2 + $0x229] sm:$0x1] %vm214_vm2, %v2525_v0 }
  0x5b   : > { %290 = vst.msk [vmem:[#allocation2 + $0x239] sm:$0x1] %vm214_vm2, %v2525_v0  ;;  %291 = vst.msk [vmem:[#allocation2 + $0x249] sm:$0x1] %vm214_vm2, %v2525_v0 }
  0x5c   : > { %292 = vst.msk [vmem:[#allocation2 + $0x259] sm:$0x1] %vm214_vm2, %v2525_v0  ;;  %293 = vst.msk [vmem:[#allocation2 + $0x269] sm:$0x1] %vm214_vm2, %v2525_v0 }
  0x5d   : > { %215 = vst.msk [vmem:[#allocation2] sm:$0x1] %vm214_vm2, %v2525_v0  ;;  %255 = vst.msk [vmem:[#allocation2 + $0x9] sm:$0x1] %vm214_vm2, %v2525_v0 }
  0x5e   : > { %225 = vst.msk [vmem:[#allocation2 + $0xa0] sm:$0x1] %vm214_vm2, %v2525_v0  ;;  %265 = vst.msk [vmem:[#allocation2 + $0xa9] sm:$0x1] %vm214_vm2, %v2525_v0 }
  0x5f   : > { %224 = vst.msk [vmem:[#allocation2 + $0x90] sm:$0x1] %vm214_vm2, %v2525_v0  ;;  %234 = vst.msk [vmem:[#allocation2 + $0x130] sm:$0x1] %vm214_vm2, %v2525_v0 }
  0x60   : > { %235 = vst.msk [vmem:[#allocation2 + $0x140] sm:$0x1] %vm214_vm2, %v2525_v0  ;;  %244 = vst.msk [vmem:[#allocation2 + $0x1d0] sm:$0x1] %vm214_vm2, %v2525_v0 }
  0x61   : > { %245 = vst.msk [vmem:[#allocation2 + $0x1e0] sm:$0x1] %vm214_vm2, %v2525_v0  ;;  %254 = vst.msk [vmem:[#allocation2 + $0x270] sm:$0x1] %vm214_vm2, %v2525_v0 }
  0x62   : > { %264 = vst.msk [vmem:[#allocation2 + $0x99] sm:$0x1] %vm214_vm2, %v2525_v0  ;;  %274 = vst.msk [vmem:[#allocation2 + $0x139] sm:$0x1] %vm214_vm2, %v2525_v0 }
  0x63   : > { %275 = vst.msk [vmem:[#allocation2 + $0x149] sm:$0x1] %vm214_vm2, %v2525_v0  ;;  %284 = vst.msk [vmem:[#allocation2 + $0x1d9] sm:$0x1] %vm214_vm2, %v2525_v0 }
  0x64   : > { %285 = vst.msk [vmem:[#allocation2 + $0x1e9] sm:$0x1] %vm214_vm2, %v2525_v0  ;;  %294 = vst.msk [vmem:[#allocation2 + $0x279] sm:$0x1] %vm214_vm2, %v2525_v0  ;;  %v392_v10 = vld [vmem:[#allocation2] sm:$0xff] }
  0x65   : > { %v393_v11 = vld [vmem:[#allocation2 + $0x8] sm:$0x3]  ;;  %v412_v12 = vld [vmem:[#allocation2 + $0xa0] sm:$0xff]  ;;  %361 = vst.msk [vmem:[#allocation2 + $0x21] sm:$0xff] %vm195_vm0, %v328_v4  ;;  %360 = vst.msk [vmem:[#allocation2 + $0x11] sm:$0xff] %vm195_vm0, %v327_v5  ;;  %v347_v4 = vmax.f32 %v315_v51, 0.0 }
  0x66   : > { %v2843_v15 = vpack.c.bf16 %v393_v11, %v392_v10  ;;  %v413_v16 = vld [vmem:[#allocation2 + $0xa8] sm:$0x3]  ;;  %362 = vst.msk [vmem:[#allocation2 + $0x31] sm:$0xff] %vm195_vm0, %v329_v6  ;;  %363 = vst.msk [vmem:[#allocation2 + $0x41] sm:$0xff] %vm195_vm0, %v330_v13 }
  0x67   : > { %v2850_v20 = vpack.c.bf16 %v413_v16, %v412_v12  ;;  %364 = vst.msk [vmem:[#allocation2 + $0x51] sm:$0xff] %vm195_vm0, %v331_v14  ;;  %365 = vst.msk [vmem:[#allocation2 + $0x61] sm:$0xff] %vm195_vm0, %v332_v17  ;;  %v432_v2 = vld [vmem:[#allocation2 + $0x140] sm:$0xff] }
  0x68   : > { %v513_v26 = vshrl.u32 %v2843_v15, 16  ;;  %v515_v27 = vshll.u32 %v2843_v15, 16  ;;  %366 = vst.msk [vmem:[#allocation2 + $0x71] sm:$0xff] %vm195_vm0, %v333_v21  ;;  %369 = vst.msk [vmem:[#allocation2 + $0xc1] sm:$0xff] %vm195_vm0, %v336_v22 }
  0x69   : > { %4432 = vst [vmem:[#allocation6_spill] sm:$0xff] %v2850_v20  ;;  %v571_v32 = vshll.u32 %v2850_v20, 16  ;;  %v569_v37 = vshrl.u32 %v2850_v20, 16  ;;  %368 = vst.msk [vmem:[#allocation2 + $0xb1] sm:$0xff] %vm195_vm0, %v335_v28 }
  0x6a   : > { %v517_v36 = vrot.slane %v515_v27, 1  ;;  %371 = vst.msk [vmem:[#allocation2 + $0xe1] sm:$0xff] %vm195_vm0, %v338_v29  ;;  %370 = vst.msk [vmem:[#allocation2 + $0xd1] sm:$0xff] %vm195_vm0, %v337_v33  ;;  %v433_v3 = vld [vmem:[#allocation2 + $0x148] sm:$0x3] }
  0x6b   : > { %v573_v41 = vrot.slane %v571_v32, 1  ;;  %373 = vst.msk [vmem:[#allocation2 + $0x101] sm:$0xff] %vm195_vm0, %v340_v34  ;;  %372 = vst.msk [vmem:[#allocation2 + $0xf1] sm:$0xff] %vm195_vm0, %v339_v38  ;;  %v2912_v35 = vpack.c.bf16 %v433_v3, %v432_v2 }
  0x6c   : > { %v518_v46 = vor.u32 %v517_v36, %v513_v26  ;;  %374 = vst.msk [vmem:[#allocation2 + $0x111] sm:$0xff] %vm195_vm0, %v341_v39  ;;  %v396_v52 = vld [vmem:[#allocation2 + $0x20] sm:$0xff]  ;;  %v397_v53 = vld [vmem:[#allocation2 + $0x28] sm:$0x3]  ;;  %v394_v54 = vld [vmem:[#allocation2 + $0x10] sm:$0xff] }
  0x6d   : > { %377 = vst.msk [vmem:[#allocation2 + $0x161] sm:$0xff] %vm195_vm0, %v344_v42  ;;  %v574_v55 = vor.u32 %v573_v41, %v569_v37  ;;  %v2881_v56 = vpack.c.bf16 %v397_v53, %v396_v52  ;;  %v395_v57 = vld [vmem:[#allocation2 + $0x18] sm:$0x3]  ;;  %v398_v58 = vld [vmem:[#allocation2 + $0x30] sm:$0xff]  ;;  %376 = vst.msk [vmem:[#allocation2 + $0x151] sm:$0xff] %vm195_vm0, %v343_v47 }
  0x6e   : > { %736 = vrot.lane.b32.xlu0 %v518_v46, %s2526_s21  ;;  %v399_v59 = vld [vmem:[#allocation2 + $0x38] sm:$0x3]  ;;  %379 = vst.msk [vmem:[#allocation2 + $0x181] sm:$0xff] %vm195_vm0, %v346_v48  ;;  %378 = vst.msk [vmem:[#allocation2 + $0x171] sm:$0xff] %vm195_vm0, %v345_v49  ;;  %v2886_v61 = vpack.c.bf16 %v395_v57, %v394_v54  ;;  %v400_v63 = vld [vmem:[#allocation2 + $0x40] sm:$0xff]  ;;  %v627_v57 = vshll.u32 %v2912_v35, 16 }
  0x6f   : > { %v2888_v62 = vpack.c.bf16 %v399_v59, %v398_v58  ;;  %v401_v0 = vld [vmem:[#allocation2 + $0x48] sm:$0x3]  ;;  %v402_v1 = vld [vmem:[#allocation2 + $0x50] sm:$0xff]  ;;  %v527_v5 = vshrl.u32 %v2881_v56, 16  ;;  %v529_v6 = vshll.u32 %v2881_v56, 16  ;;  %v404_v9 = vld [vmem:[#allocation2 + $0x60] sm:$0xff] }
  0x70   : > { %v2892_v7 = vpack.c.bf16 %v401_v0, %v400_v63  ;;  %v403_v8 = vld [vmem:[#allocation2 + $0x58] sm:$0x3]  ;;  %v406_v10 = vld [vmem:[#allocation2 + $0x70] sm:$0xff]  ;;  %381 = vst.msk [vmem:[#allocation2 + $0x1a1] sm:$0xff] %vm195_vm0, %v348_v60  ;;  %v520_v11 = vshrl.u32 %v2886_v61, 16  ;;  %v522_v12 = vshll.u32 %v2886_v61, 16 }
  0x71   : > { %v534_v13 = vshrl.u32 %v2888_v62, 16  ;;  %v536_v14 = vshll.u32 %v2888_v62, 16  ;;  %v405_v16 = vld [vmem:[#allocation2 + $0x68] sm:$0x3]  ;;  %380 = vst.msk [vmem:[#allocation2 + $0x191] sm:$0xff] %vm195_vm0, %v347_v4  ;;  %v531_v17 = vrot.slane %v529_v6, 1  ;;  %v2903_v21 = vpack.c.bf16 %v403_v8, %v402_v1 }
  0x72   : > { %4433 = vst [vmem:[#allocation7_spill] sm:$0xff] %v2892_v7  ;;  %752 = vrot.lane.b32.xlu0 %v574_v55, %s2526_s21  ;;  %v541_v18 = vshrl.u32 %v2892_v7, 16  ;;  %v543_v19 = vshll.u32 %v2892_v7, 16  ;;  %v407_v22 = vld [vmem:[#allocation2 + $0x78] sm:$0x3]  ;;  %v524_v23 = vrot.slane %v522_v12, 1  ;;  %v2905_v25 = vpack.c.bf16 %v405_v16, %v404_v9 }
  0x73   : > { %4434 = vst [vmem:[#allocation8_spill] sm:$0xff] %v2903_v21  ;;  %v538_v24 = vrot.slane %v536_v14, 1  ;;  %v2907_v26 = vpack.c.bf16 %v407_v22, %v406_v10  ;;  %v416_v27 = vld [vmem:[#allocation2 + $0xc0] sm:$0xff]  ;;  %v417_v28 = vld [vmem:[#allocation2 + $0xc8] sm:$0x3]  ;;  %v2909_v29 = vor.u32 %v531_v17, %v527_v5  ;;  %v550_v31 = vshll.u32 %v2903_v21, 16 }
  0x74   : > { %4435 = vst [vmem:[#allocation9_spill] sm:$0xff] %v2905_v25  ;;  %v545_v30 = vrot.slane %v543_v19, 1  ;;  %v414_v32 = vld [vmem:[#allocation2 + $0xb0] sm:$0xff]  ;;  %v415_v33 = vld [vmem:[#allocation2 + $0xb8] sm:$0x3]  ;;  %v420_v34 = vld [vmem:[#allocation2 + $0xe0] sm:$0xff]  ;;  %v2914_v36 = vor.u32 %v524_v23, %v520_v11  ;;  %v2928_v47 = vpack.c.bf16 %v417_v28, %v416_v27 }
  0x75   : > { %4436 = vst [vmem:[#allocation10_spill] sm:$0xff] %v2907_v26  ;;  %v2916_v37 = vor.u32 %v538_v24, %v534_v13  ;;  %v548_v38 = vshrl.u32 %v2903_v21, 16  ;;  %v557_v39 = vshll.u32 %v2905_v25, 16  ;;  %v421_v40 = vld [vmem:[#allocation2 + $0xe8] sm:$0x3]  ;;  %740 = vrot.lane.b32.xlu1 %v2909_v29, %s2526_s21  ;;  %v552_v42 = vrot.slane %v550_v31, 1 }
  0x76   : > { %v2922_v41 = vor.u32 %v545_v30, %v541_v18  ;;  %v555_v43 = vshrl.u32 %v2905_v25, 16  ;;  %v564_v44 = vshll.u32 %v2907_v26, 16  ;;  %v418_v45 = vld [vmem:[#allocation2 + $0xd0] sm:$0xff]  ;;  %738 = vrot.lane.b32.xlu0 %v2914_v36, %s2526_s21  ;;  %v2930_v48 = vpack.c.bf16 %v415_v33, %v414_v32  ;;  %v419_v50 = vld [vmem:[#allocation2 + $0xd8] sm:$0x3]  ;;  %v424_v51 = vld [vmem:[#allocation2 + $0x100] sm:$0xff] }
  0x77   : > { %v559_v46 = vrot.slane %v557_v39, 1  ;;  %v2932_v49 = vpack.c.bf16 %v421_v40, %v420_v34  ;;  %v425_v52 = vld [vmem:[#allocation2 + $0x108] sm:$0x3]  ;;  %v2934_v53 = vor.u32 %v552_v42, %v548_v38  ;;  %v562_v54 = vshrl.u32 %v2907_v26, 16  ;;  %v422_v4 = vld [vmem:[#allocation2 + $0xf0] sm:$0xff]  ;;  %v436_v23 = vld [vmem:[#allocation2 + $0x160] sm:$0xff] }
  0x78   : > { %v585_v55 = vshll.u32 %v2928_v47, 16  ;;  %v566_v58 = vrot.slane %v564_v44, 1  ;;  %v578_v59 = vshll.u32 %v2930_v48, 16  ;;  %v2942_v60 = vpack.c.bf16 %v419_v50, %v418_v45  ;;  %v423_v5 = vld [vmem:[#allocation2 + $0xf8] sm:$0x3]  ;;  %v426_v10 = vld [vmem:[#allocation2 + $0x110] sm:$0xff] }
  0x79   : > { %4437 = vst [vmem:[#allocation11_spill] sm:$0xff] %v2932_v49  ;;  %742 = vrot.lane.b32.xlu1 %v2916_v37, %s2526_s21  ;;  %v2944_v63 = vpack.c.bf16 %v425_v52, %v424_v51  ;;  %v2948_v0 = vor.u32 %v559_v46, %v555_v43  ;;  %v583_v1 = vshrl.u32 %v2928_v47, 16  ;;  %v599_v3 = vshll.u32 %v2932_v49, 16  ;;  %v427_v11 = vld [vmem:[#allocation2 + $0x118] sm:$0x3]  ;;  %v434_v31 = vld [vmem:[#allocation2 + $0x150] sm:$0xff] }
  0x7a   : > { %4438 = vst [vmem:[#allocation12_spill] sm:$0xff] %v2942_v60  ;;  %744 = vrot.lane.b32.xlu0 %v2922_v41, %s2526_s21  ;;  %v587_v2 = vrot.slane %v585_v55, 1  ;;  %v576_v6 = vshrl.u32 %v2930_v48, 16  ;;  %v625_v8 = vshrl.u32 %v2912_v35, 16  ;;  %v629_v9 = vrot.slane %v627_v57, 1  ;;  %v440_v39 = vld [vmem:[#allocation2 + $0x180] sm:$0xff] }
  0x7b   : > { %4439 = vst [vmem:[#allocation13_spill] sm:$0xff] %v2944_v63  ;;  %v2956_v12 = vor.u32 %v566_v58, %v562_v54  ;;  %v580_v13 = vrot.slane %v578_v59, 1  ;;  %v592_v14 = vshll.u32 %v2942_v60, 16  ;;  %v2959_v16 = vpack.c.bf16 %v423_v5, %v422_v4  ;;  %v437_v27 = vld [vmem:[#allocation2 + $0x168] sm:$0x3]  ;;  %v438_v45 = vld [vmem:[#allocation2 + $0x170] sm:$0xff] }
  0x7c   : > { %v2963_v17 = vor.u32 %v587_v2, %v583_v1  ;;  %v597_v18 = vshrl.u32 %v2932_v49, 16  ;;  %v601_v19 = vrot.slane %v599_v3, 1  ;;  %v613_v22 = vshll.u32 %v2944_v63, 16  ;;  %v435_v28 = vld [vmem:[#allocation2 + $0x158] sm:$0x3]  ;;  %v444_v50 = vld [vmem:[#allocation2 + $0x1a0] sm:$0xff] }
  0x7d   : > { %746 = vrot.lane.b32.xlu1 %v2934_v53, %s2526_s21  ;;  %4440 = vst [vmem:[#allocation14_spill] sm:$0xff] %v2959_v16  ;;  %v2967_v24 = vpack.c.bf16 %v427_v11, %v426_v10  ;;  %v590_v30 = vshrl.u32 %v2942_v60, 16  ;;  %v2972_v32 = vor.u32 %v580_v13, %v576_v6  ;;  %v594_v33 = vrot.slane %v592_v14, 1  ;;  %v441_v40 = vld [vmem:[#allocation2 + $0x188] sm:$0x3]  ;;  %v317_v54 = vld [vmem:[%s2639_s28 + $0xb0] sm:$0xff] }
  0x7e   : > { %748 = vrot.lane.b32.xlu0 %v2948_v0, %s2526_s21  ;;  %4441 = vst [vmem:[#allocation15_spill] sm:$0xff] %v2963_v17  ;;  %v611_v34 = vshrl.u32 %v2944_v63, 16  ;;  %v606_v38 = vshll.u32 %v2959_v16, 16  ;;  %v2978_v42 = vor.u32 %v601_v19, %v597_v18  ;;  %v615_v43 = vrot.slane %v613_v22, 1  ;;  %v439_v46 = vld [vmem:[#allocation2 + $0x178] sm:$0x3] }
  0x7f   : > { %4442 = vst [vmem:[#allocation16_spill] sm:$0xff] %v2967_v24  ;;  %v2980_v44 = vpack.c.bf16 %v437_v27, %v436_v23  ;;  %v620_v51 = vshll.u32 %v2967_v24, 16  ;;  %v445_v52 = vld [vmem:[#allocation2 + $0x1a8] sm:$0x3]  ;;  %v604_v55 = vshrl.u32 %v2959_v16, 16  ;;  %v2985_v57 = vpack.c.bf16 %v435_v28, %v434_v31  ;;  %v319_v59 = vld [vmem:[%s2639_s28 + $0xc0] sm:$0xff] }
  0x80   : > { %4443 = vst [vmem:[#allocation17_spill] sm:$0xff] %v2978_v42  ;;  %v320_v58 = vld [vmem:[%s2639_s28 + $0xc8] sm:$0xff]  ;;  %v2991_v1 = vor.u32 %v594_v33, %v590_v30  ;;  %v608_v2 = vrot.slane %v606_v38, 1  ;;  %v630_v3 = vor.u32 %v629_v9, %v625_v8  ;;  %v322_v4 = vld [vmem:[%s2639_s28 + $0xd8] sm:$0xff]  ;;  %v2996_v5 = vor.u32 %v615_v43, %v611_v34  ;;  %v321_v13 = vld [vmem:[%s2639_s28 + $0xd0] sm:$0xff] }
  0x81   : > { %750 = vrot.lane.b32.xlu1 %v2956_v12, %s2526_s21  ;;  %v618_v6 = vshrl.u32 %v2967_v24, 16  ;;  %v641_v10 = vshll.u32 %v2980_v44, 16  ;;  %v3000_v11 = vpack.c.bf16 %v441_v40, %v440_v39  ;;  %v324_v14 = vld [vmem:[%s2639_s28 + $0xe8] sm:$0xff]  ;;  %v622_v18 = vrot.slane %v620_v51, 1  ;;  %v443_v9 = vld [vmem:[#allocation2 + $0x198] sm:$0x3] }
  0x82   : > { %756 = vrot.lane.b32.xlu0 %v2963_v17, %s2526_s21  ;;  %4444 = vst [vmem:[#allocation18_spill] sm:$0xff] %v2991_v1  ;;  %4445 = vst [vmem:[#allocation19_spill] sm:$0xff] %v2996_v5  ;;  %v3004_v19 = vpack.c.bf16 %v439_v46, %v438_v45  ;;  %v3006_v8 = vpack.c.bf16 %v445_v52, %v444_v50  ;;  %v452_v22 = vld [vmem:[#allocation2 + $0x1e0] sm:$0xff]  ;;  %v453_v23 = vld [vmem:[#allocation2 + $0x1e8] sm:$0x3]  ;;  %v349_v27 = vmax.f32 %v317_v54, 0.0 }
  0x83   : > { %4446 = vst [vmem:[#allocation20_spill] sm:$0xff] %v3000_v11  ;;  %v323_v28 = vld [vmem:[%s2639_s28 + $0xe0] sm:$0xff]  ;;  %v325_v30 = vld [vmem:[%s2639_s28 + $0xf0] sm:$0xff]  ;;  %v639_v31 = vshrl.u32 %v2980_v44, 16  ;;  %v634_v33 = vshll.u32 %v2985_v57, 16  ;;  %v352_v34 = vmax.f32 %v320_v58, 0.0  ;;  %v3014_v39 = vor.u32 %v608_v2, %v604_v55 }
  0x84   : > { %4447 = vst [vmem:[#allocation21_spill] sm:$0xff] %v3006_v8  ;;  %v351_v38 = vmax.f32 %v319_v59, 0.0  ;;  %v442_v40 = vld [vmem:[#allocation2 + $0x190] sm:$0xff]  ;;  %382 = vst.msk [vmem:[#allocation2 + $0x1b1] sm:$0xff] %vm195_vm0, %v349_v27  ;;  %v354_v43 = vmax.f32 %v322_v4, 0.0  ;;  %v353_v45 = vmax.f32 %v321_v13, 0.0  ;;  %v3027_v58 = vpack.c.bf16 %v453_v23, %v452_v22 }
  0x85   : > { %754 = vrot.lane.b32.xlu1 %v2972_v32, %s2526_s21  ;;  %4448 = vst [vmem:[#allocation22_spill] sm:$0xff] %v3014_v39  ;;  %v356_v46 = vmax.f32 %v324_v14, 0.0  ;;  %v643_v50 = vrot.slane %v641_v10, 1  ;;  %v655_v51 = vshll.u32 %v3000_v11, 16  ;;  %385 = vst.msk [vmem:[#allocation2 + $0x201] sm:$0xff] %vm195_vm0, %v352_v34  ;;  %v355_v52 = vmax.f32 %v323_v28, 0.0 }
  0x86   : > { %760 = vrot.lane.b32.xlu0 %v2978_v42, %s2526_s21  ;;  %384 = vst.msk [vmem:[#allocation2 + $0x1f1] sm:$0xff] %vm195_vm0, %v351_v38  ;;  %v357_v54 = vmax.f32 %v325_v30, 0.0  ;;  %387 = vst.msk [vmem:[#allocation2 + $0x221] sm:$0xff] %vm195_vm0, %v354_v43  ;;  %v3025_v55 = vpack.c.bf16 %v443_v9, %v442_v40  ;;  %v3033_v59 = vor.u32 %v622_v18, %v618_v6  ;;  %v632_v2 = vshrl.u32 %v2985_v57, 16 }
  0x87   : > { %386 = vst.msk [vmem:[#allocation2 + $0x211] sm:$0xff] %vm195_vm0, %v353_v45  ;;  %389 = vst.msk [vmem:[#allocation2 + $0x241] sm:$0xff] %vm195_vm0, %v356_v46  ;;  %v636_v4 = vrot.slane %v634_v33, 1  ;;  %v648_v10 = vshll.u32 %v3004_v19, 16  ;;  %v3038_v13 = vor.u32 %v643_v50, %v639_v31  ;;  %v653_v14 = vshrl.u32 %v3000_v11, 16 }
  0x88   : > { %4449 = vst [vmem:[#allocation23_spill] sm:$0xff] %v3025_v55  ;;  %388 = vst.msk [vmem:[#allocation2 + $0x231] sm:$0xff] %vm195_vm0, %v355_v52  ;;  %v657_v9 = vrot.slane %v655_v51, 1  ;;  %v669_v22 = vshll.u32 %v3006_v8, 16  ;;  %v662_v23 = vshll.u32 %v3025_v55, 16  ;;  %v683_v27 = vshll.u32 %v3027_v58, 16 }
  0x89   : > { %758 = vrot.lane.b32.xlu1 %v2991_v1, %s2526_s21  ;;  %390 = vst.msk [vmem:[#allocation2 + $0x251] sm:$0xff] %vm195_vm0, %v357_v54  ;;  %4450 = vst [vmem:[#allocation24_spill] sm:$0xff] %v3033_v59  ;;  %v3046_v28 = vor.u32 %v636_v4, %v632_v2  ;;  %v650_v30 = vrot.slane %v648_v10, 1  ;;  %v667_v40 = vshrl.u32 %v3006_v8, 16  ;;  %v660_v54 = vshrl.u32 %v3025_v55, 16 }
  0x8a   : > { %764 = vrot.lane.b32.xlu0 %v2996_v5, %s2526_s21  ;;  %v3053_v38 = vor.u32 %v657_v9, %v653_v14  ;;  %v671_v43 = vrot.slane %v669_v22, 1  ;;  %v664_v2 = vrot.slane %v662_v23, 1  ;;  %v681_v4 = vshrl.u32 %v3027_v58, 16 }
  0x8b   : > { %v446_v6 = vld [vmem:[#allocation2 + $0x1b0] sm:$0xff]  ;;  %v447_v18 = vld [vmem:[#allocation2 + $0x1b8] sm:$0x3]  ;;  %v685_v10 = vrot.slane %v683_v27, 1 }
  0x8c   : > { %v3049_v31 = vpack.c.bf16 %v447_v18, %v446_v6  ;;  %v456_v33 = vld [vmem:[#allocation2 + $0x200] sm:$0xff]  ;;  %v457_v34 = vld [vmem:[#allocation2 + $0x208] sm:$0x3]  ;;  %v3069_v6 = vor.u32 %v671_v43, %v667_v40  ;;  %v3074_v5 = vor.u32 %v664_v2, %v660_v54 }
  0x8d   : > { %762 = vrot.lane.b32.xlu1 %v3014_v39, %s2526_s21  ;;  %v3056_v45 = vpack.c.bf16 %v457_v34, %v456_v33  ;;  %v454_v46 = vld [vmem:[#allocation2 + $0x1f0] sm:$0xff]  ;;  %v455_v50 = vld [vmem:[#allocation2 + $0x1f8] sm:$0x3]  ;;  %v460_v51 = vld [vmem:[#allocation2 + $0x220] sm:$0xff] }
  0x8e   : > { %768 = vrot.lane.b32.xlu0 %v630_v3, %s2526_s21  ;;  %v646_v3 = vshrl.u32 %v3004_v19, 16  ;;  %4451 = vst [vmem:[#allocation25_spill] sm:$0xff] %v3049_v31  ;;  %v461_v52 = vld [vmem:[#allocation2 + $0x228] sm:$0x3]  ;;  %v676_v9 = vshll.u32 %v3049_v31, 16  ;;  %v3065_v22 = vpack.c.bf16 %v455_v50, %v454_v46  ;;  %v458_v33 = vld [vmem:[#allocation2 + $0x210] sm:$0xff] }
  0x8f   : > { %4452 = vst [vmem:[#allocation26_spill] sm:$0xff] %v3056_v45  ;;  %v697_v18 = vshll.u32 %v3056_v45, 16  ;;  %v3072_v23 = vpack.c.bf16 %v461_v52, %v460_v51  ;;  %v459_v27 = vld [vmem:[#allocation2 + $0x218] sm:$0x3]  ;;  %v464_v34 = vld [vmem:[#allocation2 + $0x240] sm:$0xff]  ;;  %v695_v50 = vshrl.u32 %v3056_v45, 16 }
  0x90   : > { %v3062_v14 = vor.u32 %v650_v30, %v646_v3  ;;  %v686_v3 = vor.u32 %v685_v10, %v681_v4  ;;  %v674_v30 = vshrl.u32 %v3049_v31, 16  ;;  %v678_v46 = vrot.slane %v676_v9, 1  ;;  %v462_v2 = vld [vmem:[#allocation2 + $0x230] sm:$0xff]  ;;  %v463_v4 = vld [vmem:[#allocation2 + $0x238] sm:$0x3] }
  0x91   : > { %766 = vrot.lane.b32.xlu1 %v3033_v59, %s2526_s21  ;;  %4453 = vst [vmem:[#allocation27_spill] sm:$0xff] %v3072_v23  ;;  %v465_v59 = vld [vmem:[#allocation2 + $0x248] sm:$0x3]  ;;  %v690_v40 = vshll.u32 %v3065_v22, 16  ;;  %v3080_v43 = vpack.c.bf16 %v459_v27, %v458_v33  ;;  %v699_v51 = vrot.slane %v697_v18, 1  ;;  %v711_v52 = vshll.u32 %v3072_v23, 16 }
  0x92   : > { %772 = vrot.lane.b32.xlu0 %v3038_v13, %s2526_s21  ;;  %v3086_v54 = vpack.c.bf16 %v465_v59, %v464_v34  ;;  %v688_v10 = vshrl.u32 %v3065_v22, 16  ;;  %v3091_v9 = vor.u32 %v678_v46, %v674_v30  ;;  %v3094_v39 = vpack.c.bf16 %v463_v4, %v462_v2  ;;  %v466_v1 = vld [vmem:[#allocation2 + $0x250] sm:$0xff]  ;;  %v467_v17 = vld [vmem:[#allocation2 + $0x258] sm:$0x3] }
  0x93   : > { %4454 = vst [vmem:[#allocation28_spill] sm:$0xff] %v3080_v43  ;;  %v692_v33 = vrot.slane %v690_v40, 1  ;;  %v704_v27 = vshll.u32 %v3080_v43, 16  ;;  %v3097_v18 = vor.u32 %v699_v51, %v695_v50  ;;  %v709_v59 = vshrl.u32 %v3072_v23, 16 }
  0x94   : > { %4455 = vst [vmem:[#allocation29_spill] sm:$0xff] %v3086_v54  ;;  %4456 = vst [vmem:[#allocation30_spill] sm:$0xff] %v3094_v39  ;;  %v713_v34 = vrot.slane %v711_v52, 1  ;;  %v725_v42 = vshll.u32 %v3086_v54, 16  ;;  %v702_v45 = vshrl.u32 %v3080_v43, 16  ;;  %v718_v40 = vshll.u32 %v3094_v39, 16 }
  0x95   : > { %770 = vrot.lane.b32.xlu1 %v3046_v28, %s2526_s21  ;;  %v3104_v30 = vor.u32 %v692_v33, %v688_v10  ;;  %v706_v46 = vrot.slane %v704_v27, 1  ;;  %v723_v51 = vshrl.u32 %v3086_v54, 16  ;;  %v716_v4 = vshrl.u32 %v3094_v39, 16  ;;  %v302_v54 = vld [vmem:[%s2639_s28 + $0x38] sm:$0xff] }
  0x96   : > { %776 = vrot.lane.b32.xlu0 %v3053_v38, %s2526_s21  ;;  %v3111_v50 = vor.u32 %v713_v34, %v709_v59  ;;  %v727_v52 = vrot.slane %v725_v42, 1  ;;  %v720_v10 = vrot.slane %v718_v40, 1  ;;  %v3138_v34 = vrot.slane %v2881_v56, 1 }
  0x97   : > { %v3116_v2 = vor.u32 %v706_v46, %v702_v45  ;;  %v832_v45 = vrot.slane %v2843_v15, 1  ;;  %v4370_v46 = vrot.slane %v2886_v61, 1  ;;  %v3146_v40 = vrot.slane %v2892_v7, 1 }
  0x98   : > { %4458 = vst [vmem:[#allocation32_spill] sm:$0xff] %v3111_v50 }
  0x99   : > { %774 = vrot.lane.b32.xlu1 %v3062_v14, %s2526_s21  ;;  %4459 = vst [vmem:[#allocation33_spill] sm:$0xff] %v3116_v2 }
  0x9a   : > { %780 = vrot.lane.b32.xlu0 %v3069_v6, %s2526_s21 }
  0x9d   : > { %778 = vrot.lane.b32.xlu1 %v3074_v5, %s2526_s21 }
  0x9e   : > { %784 = vrot.lane.b32.xlu0 %v686_v3, %s2526_s21  ;;  %v3107_v3 = vpack.c.bf16 %v467_v17, %v466_v1  ;;  %v3122_v17 = vor.u32 %v727_v52, %v723_v51  ;;  %v3126_v1 = vor.u32 %v720_v10, %v716_v4  ;;  %v3152_v51 = vrot.slane %v2888_v62, 1 }
  0x9f   : > { %v3157_v52 = vrot.slane %v2905_v25, 1  ;;  %v3162_v4 = vrot.slane %v2903_v21, 1  ;;  %v840_v10 = vrot.slane %v2850_v20, 1  ;;  %v3198_v20 = vrot.slane %v2959_v16, 1 }
  0xa0   : > { %4457 = vst [vmem:[#allocation31_spill] sm:$0xff] %v3107_v3  ;;  %v732_v33 = vshll.u32 %v3107_v3, 16  ;;  %4460 = vst [vmem:[#allocation34_spill] sm:$0xff] %v3122_v17  ;;  %v730_v42 = vshrl.u32 %v3107_v3, 16  ;;  %v3210_v3 = vrot.slane %v2980_v44, 1 }
  0xa1   : > { %782 = vrot.lane.b32.xlu1 %v3091_v9, %s2526_s21  ;;  %4461 = vst [vmem:[#allocation35_spill] sm:$0xff] %v3126_v1  ;;  %4463 = vst [vmem:[#allocation37_spill] sm:$0xff] %v3157_v52 }
  0xa2   : > { %788 = vrot.lane.b32.xlu0 %v3097_v18, %s2526_s21  ;;  %v734_v27 = vrot.slane %v732_v33, 1  ;;  %v3170_v33 = vrot.slane %v2907_v26, 1  ;;  %4468 = vst [vmem:[#allocation42_spill] sm:$0xff] %v3198_v20 }
  0xa4   : > { %v3134_v59 = vor.u32 %v734_v27, %v730_v42  ;;  %4464 = vst [vmem:[#allocation38_spill] sm:$0xff] %v3170_v33  ;;  %v3174_v42 = vrot.slane %v2928_v47, 1  ;;  %v4372_v27 = vrot.slane %v2930_v48, 1 }
  0xa5   : > { %786 = vrot.lane.b32.xlu1 %v3104_v30, %s2526_s21 }
  0xa6   : > { %792 = vrot.lane.b32.xlu0 %v3111_v50, %s2526_s21  ;;  %4462 = vst [vmem:[#allocation36_spill] sm:$0xff] %v3134_v59 }
  0xa9   : > { %790 = vrot.lane.b32.xlu1 %v3116_v2, %s2526_s21  ;;  %v410_v2 = vld [vmem:[#allocation2 + $0x90] sm:$0xff] }
  0xaa   : > { %796 = vrot.lane.b32.xlu0 %v3122_v17, %s2526_s21  ;;  %v4393_v17 = vrot.slane %v2985_v57, 1 }
  0xad   : > { %794 = vrot.lane.b32.xlu1 %v3126_v1, %s2526_s21  ;;  %v2528_v1 = vmov 0  }
  0xae   : > { %864 = vrot.lane.b32.xlu0 %v832_v45, %s2527_s27  ;;  %v3182_v45 = vrot.slane %v2932_v49, 1  ;;  %2045 = vmatprep.subr.bf16.mxu0 %v2528_v1 }
  0xaf   : > { %2379 = vmatprep.subr.bf16.mxu1 %v2528_v1 }
  0xb0   : > { %4465 = vst [vmem:[#allocation39_spill] sm:$0xff] %v3182_v45 }
  0xb1   : > { %798 = vrot.lane.b32.xlu1 %v3134_v59, %s2526_s21  ;;  %v3206_v59 = vrot.slane %v2967_v24, 1  ;;  %v3232_v24 = vrot.slane %v3006_v8, 1 }
  0xb2   : > { %868 = vrot.lane.b32.xlu0 %v3138_v34, %s2527_s27 }
  0xb3   : > { %4469 = vst [vmem:[#allocation43_spill] sm:$0xff] %v3206_v59  ;;  %4470 = vst [vmem:[#allocation44_spill] sm:$0xff] %v3232_v24 }
  0xb5   : > { %866 = vrot.lane.b32.xlu1 %v4370_v46, %s2527_s27  ;;  %v3193_v46 = vrot.slane %v2944_v63, 1 }
  0xb6   : > { %872 = vrot.lane.b32.xlu0 %v3146_v40, %s2527_s27 }
  0xb7   : > { %4467 = vst [vmem:[#allocation41_spill] sm:$0xff] %v3193_v46 }
  0xb9   : > { %870 = vrot.lane.b32.xlu1 %v3152_v51, %s2527_s27 }
  0xba   : > { %876 = vrot.lane.b32.xlu0 %v3157_v52, %s2527_s27 }
  0xbd   : > { %874 = vrot.lane.b32.xlu1 %v3162_v4, %s2527_s27 }
  0xbe   : > { %880 = vrot.lane.b32.xlu0 %v840_v10, %s2527_s27  ;;  %v3188_v10 = vrot.slane %v2942_v60, 1 }
  0xc0   : > { %4466 = vst [vmem:[#allocation40_spill] sm:$0xff] %v3188_v10 }
  0xc1   : > { %878 = vrot.lane.b32.xlu1 %v3170_v33, %s2527_s27 }
  0xc2   : > { %884 = vrot.lane.b32.xlu0 %v3174_v42, %s2527_s27 }
  0xc5   : > { %882 = vrot.lane.b32.xlu1 %v4372_v27, %s2527_s27  ;;  %v848_v27 = vrot.slane %v2912_v35, 1 }
  0xc6   : > { %888 = vrot.lane.b32.xlu0 %v3182_v45, %s2527_s27 }
  0xc9   : > { %886 = vrot.lane.b32.xlu1 %v3188_v10, %s2527_s27 }
  0xca   : > { %892 = vrot.lane.b32.xlu0 %v3193_v46, %s2527_s27  ;;  %v3219_v46 = vrot.slane %v3000_v11, 1 }
  0xcd   : > { %890 = vrot.lane.b32.xlu1 %v3198_v20, %s2527_s27  ;;  %v334_v20 = vmax.f32 %v302_v54, 0.0  ;;  %v3243_v54 = vrot.slane %v3025_v55, 1 }
  0xce   : > { %896 = vrot.lane.b32.xlu0 %v848_v27, %s2527_s27  ;;  %v3226_v27 = vrot.slane %v3004_v19, 1 }
  0xcf   : > { %367 = vst.msk [vmem:[#allocation2 + $0x81] sm:$0xff] %vm195_vm0, %v334_v20  ;;  %v2447_v20 = vld [vmem:[%s4353_s1] sm:$0xff]  }
  0xd0   : > { %2046 = vmatpush1.bf16.msra.mxu0 %v2447_v20  ;;  %2388 = vmatpush1.bf16.msra.mxu1 %v2447_v20 }
  0xd1   : > { %894 = vrot.lane.b32.xlu1 %v3206_v59, %s2527_s27  ;;  %v318_v59 = vld [vmem:[%s2639_s28 + $0xb8] sm:$0xff]  ;;  %2047 = vmatprep.subr.bf16.mxu0 %v2528_v1 }
  0xd2   : > { %900 = vrot.lane.b32.xlu0 %v3210_v3, %s2527_s27  ;;  %v350_v63 = vmax.f32 %v318_v59, 0.0  ;;  %v2448_v59 = vld [vmem:[%s4353_s1 + $0x8] sm:$0xff]   ;;  %2380 = vmatprep.subr.bf16.mxu1 %v2528_v1 }
  0xd4   : > { %383 = vst.msk [vmem:[#allocation2 + $0x1c1] sm:$0xff] %vm195_vm0, %v350_v63  ;;  %v3255_v63 = vrot.slane %v3049_v31, 1  ;;  %2048 = vmatpush1.bf16.msra.mxu0 %v2448_v59  ;;  %2389 = vmatpush1.bf16.msra.mxu1 %v2448_v59  ;;  %v2450_v59 = vld [vmem:[%s4353_s1 + $0x18] sm:$0xff]  }
  0xd5   : > { %898 = vrot.lane.b32.xlu1 %v4393_v17, %s2527_s27  ;;  %2049 = vmatprep.subr.bf16.mxu0 %v2528_v1  ;;  %v2449_v17 = vld [vmem:[%s4353_s1 + $0x10] sm:$0xff]  }
  0xd6   : > { %904 = vrot.lane.b32.xlu0 %v3219_v46, %s2527_s27  ;;  %4471 = vst [vmem:[#allocation45_spill] sm:$0xff] %v3255_v63  ;;  %2381 = vmatprep.subr.bf16.mxu1 %v2528_v1 }
  0xd8   : > { %2050 = vmatpush1.bf16.msra.mxu0 %v2449_v17  ;;  %2390 = vmatpush1.bf16.msra.mxu1 %v2449_v17  ;;  %v2451_v17 = vld [vmem:[%s4353_s1 + $0x20] sm:$0xff]  }
  0xd9   : > { %902 = vrot.lane.b32.xlu1 %v3226_v27, %s2527_s27  ;;  %2051 = vmatprep.subr.bf16.mxu0 %v2528_v1 }
  0xda   : > { %908 = vrot.lane.b32.xlu0 %v3232_v24, %s2527_s27  ;;  %2382 = vmatprep.subr.bf16.mxu1 %v2528_v1 }
  0xdc   : > { %2052 = vmatpush1.bf16.msra.mxu0 %v2450_v59  ;;  %2391 = vmatpush1.bf16.msra.mxu1 %v2450_v59  ;;  %v2452_v59 = vld [vmem:[%s4353_s1 + $0x28] sm:$0xff]  }
  0xdd   : > { %906 = vrot.lane.b32.xlu1 %v3243_v54, %s2527_s27  ;;  %2053 = vmatprep.subr.bf16.mxu0 %v2528_v1 }
  0xde   : > { %932 = vrot.lane.b32.xlu0 %v2886_v61, %s2529_s6  ;;  %2383 = vmatprep.subr.bf16.mxu1 %v2528_v1 }
  0xe0   : > { %v3260_v20 = vpop.permute.xlu0 %736  ;;  %2054 = vmatpush1.bf16.msra.mxu0 %v2451_v17  ;;  %2392 = vmatpush1.bf16.msra.mxu1 %v2451_v17 }
  0xe1   : > { %910 = vrot.lane.b32.xlu1 %v3255_v63, %s2527_s27  ;;  %2055 = vmatprep.subr.bf16.mxu0 %v2528_v1 }
  0xe2   : > { %964 = vrot.lane.b32.xlu0 %v2985_v57, %s2529_s6  ;;  %2384 = vmatprep.subr.bf16.mxu1 %v2528_v1 }
  0xe4   : > { %v3271_v16 = vpop.permute.xlu0 %752  ;;  %2056 = vmatpush1.bf16.msra.mxu0 %v2452_v59  ;;  %2393 = vmatpush1.bf16.msra.mxu1 %v2452_v59  ;;  %v2454_v59 = vld [vmem:[%s4353_s1 + $0x38] sm:$0xff]  }
  0xe5   : > { %4472 = vst [vmem:[#allocation46_spill] sm:$0xff] %v3271_v16  ;;  %934 = vrot.lane.b32.xlu1 %v2881_v56, %s2529_s6  ;;  %2057 = vmatprep.subr.bf16.mxu0 %v2528_v1 }
  0xe6   : > { %1024 = vrot.lane.b32.xlu0 %v2914_v36, %s2530_s11  ;;  %2385 = vmatprep.subr.bf16.mxu1 %v2528_v1 }
  0xe7   : > { %v3282_v39 = vpop.permute.xlu1 %740 }
  0xe8   : > { %v3287_v16 = vpop.permute.xlu0 %738 }
  0xe9   : > { %966 = vrot.lane.b32.xlu1 %v2980_v44, %s2529_s6 }
  0xea   : > { %1056 = vrot.lane.b32.xlu0 %v3046_v28, %s2530_s11  ;;  %v4474_v28 = vrot.slane %v2886_v61, 1 }
  0xeb   : > { %v3295_v36 = vpop.permute.xlu1 %742 }
  0xec   : > { %v3300_v45 = vpop.permute.xlu0 %744 }
  0xed   : > { %4473 = vst [vmem:[#allocation47_spill] sm:$0xff] %v3300_v45  ;;  %1026 = vrot.lane.b32.xlu1 %v2909_v29, %s2530_s11  ;;  %v2453_v45 = vld [vmem:[%s4353_s1 + $0x30] sm:$0xff]  }
  0xee   : > { %1092 = vrot.lane.b32.xlu0 %v4474_v28, %s2531_s23  ;;  %2058 = vmatpush1.bf16.msra.mxu0 %v2453_v45  ;;  %v4477_v28 = vrot.slane %v2985_v57, 1 }
  0xef   : > { %v3309_v17 = vpop.permute.xlu1 %746  ;;  %2059 = vmatprep.subr.bf16.mxu0 %v2528_v1  ;;  %2394 = vmatpush1.bf16.msra.mxu1 %v2453_v45  ;;  %v2455_v45 = vld [vmem:[%s4353_s1 + $0x40] sm:$0xff]  }
  0xf0   : > { %4475 = vst [vmem:[#allocation48_spill] sm:$0xff] %v3309_v17  ;;  %v3314_v50 = vpop.permute.xlu0 %748  ;;  %2386 = vmatprep.subr.bf16.mxu1 %v2528_v1 }
  0xf1   : > { %4476 = vst [vmem:[#allocation49_spill] sm:$0xff] %v3314_v50  ;;  %1058 = vrot.lane.b32.xlu1 %v3038_v13, %s2530_s11 }
  0xf2   : > { %1124 = vrot.lane.b32.xlu0 %v4477_v28, %s2531_s23  ;;  %2060 = vmatpush1.bf16.msra.mxu0 %v2454_v59 }
  0xf3   : > { %v3323_v17 = vpop.permute.xlu1 %750  ;;  %2061 = vmatprep.subr.bf16.mxu0 %v2528_v1  ;;  %2395 = vmatpush1.bf16.msra.mxu1 %v2454_v59 }
  0xf4   : > { %4478 = vst [vmem:[#allocation50_spill] sm:$0xff] %v3323_v17  ;;  %v3328_v50 = vpop.permute.xlu0 %756  ;;  %2387 = vmatprep.subr.bf16.mxu1 %v2528_v1  ;;  %v2319_v17 = vcombine.low %v3138_v34, %v3152_v51  ;;  %v2335_v1 = vcombine.low %v3210_v3, %v3226_v27 }
  0xf5   : > { %4479 = vst [vmem:[#allocation51_spill] sm:$0xff] %v3328_v50  ;;  %1094 = vrot.lane.b32.xlu1 %v3138_v34, %s2531_s23 }
  0xf6   : > { %1160 = vrot.lane.b32.xlu0 %v2881_v56, %s2532_s29  ;;  %2062 = vmatpush1.bf16.msra.mxu0 %v2455_v45 }
  0xf7   : > { %v3336_v28 = vpop.permute.xlu1 %754  ;;  %2359 = vmatprep.mubr.msk.bf16.mxu0 %vm195_vm0, %v2319_v17  ;;  %2396 = vmatpush1.bf16.msra.mxu1 %v2455_v45 }
  0xf8   : > { %4480 = vst [vmem:[#allocation52_spill] sm:$0xff] %v3336_v28  ;;  %v3341_v50 = vpop.permute.xlu0 %760  ;;  %2367 = vmatprep.mubr.msk.bf16.mxu1 %vm195_vm0, %v2335_v1 }
  0xf9   : > { %4481 = vst [vmem:[#allocation53_spill] sm:$0xff] %v3341_v50  ;;  %1126 = vrot.lane.b32.xlu1 %v3210_v3, %s2531_s23 }
  0xfa   : > { %1192 = vrot.lane.b32.xlu0 %v2980_v44, %s2532_s29 }
  0xfb   : > { %v3350_v28 = vpop.permute.xlu1 %758 }
  0xfc   : > { %4482 = vst [vmem:[#allocation54_spill] sm:$0xff] %v3350_v28  ;;  %v3353_v59 = vpop.permute.xlu0 %764 }
  0xfd   : > { %4483 = vst [vmem:[#allocation55_spill] sm:$0xff] %v3353_v59  ;;  %1162 = vrot.lane.b32.xlu1 %v2888_v62, %s2532_s29 }
  0xfe   : > { %1252 = vrot.lane.b32.xlu0 %v2909_v29, %s2533_s5 }
  0xff   : > { %v3361_v34 = vpop.permute.xlu1 %762 }
 0x100   : > { %4484 = vst [vmem:[#allocation56_spill] sm:$0xff] %v3361_v34  ;;  %v3364_v50 = vpop.permute.xlu0 %768 }
 0x101   : > { %1194 = vrot.lane.b32.xlu1 %v3004_v19, %s2532_s29 }
 0x102   : > { %1284 = vrot.lane.b32.xlu0 %v3038_v13, %s2533_s5 }
 0x103   : > { %v3370_v17 = vpop.permute.xlu1 %766 }
 0x104   : > { %4485 = vst [vmem:[#allocation57_spill] sm:$0xff] %v3370_v17  ;;  %v3372_v45 = vpop.permute.xlu0 %772 }
 0x105   : > { %1254 = vrot.lane.b32.xlu1 %v2916_v37, %s2533_s5 }
 0x106   : > { %936 = vrot.lane.b32.xlu0 %v2888_v62, %s2529_s6 }
 0x107   : > { %v3378_v29 = vpop.permute.xlu1 %770 }
 0x108   : > { %v3380_v3 = vpop.permute.xlu0 %776 }
 0x109   : > { %4486 = vst [vmem:[#allocation58_spill] sm:$0xff] %v3380_v3  ;;  %1286 = vrot.lane.b32.xlu1 %v3062_v14, %s2533_s5  ;;  %v448_v3 = vld [vmem:[#allocation2 + $0x1c0] sm:$0xff] }
 0x10a   : > { %968 = vrot.lane.b32.xlu0 %v3004_v19, %s2529_s6 }
 0x10b   : > { %v3386_v13 = vpop.permute.xlu1 %774 }
 0x10c   : > { %v3388_v1 = vpop.permute.xlu0 %780 }
 0x10d   : > { %4487 = vst [vmem:[#allocation59_spill] sm:$0xff] %v3388_v1  ;;  %938 = vrot.lane.b32.xlu1 %v2892_v7, %s2529_s6 }
 0x10e   : > { %1028 = vrot.lane.b32.xlu0 %v2916_v37, %s2530_s11 }
 0x10f   : > { %v3394_v17 = vpop.permute.xlu1 %778 }
 0x110   : > { %4488 = vst [vmem:[#allocation60_spill] sm:$0xff] %v3394_v17  ;;  %v3396_v59 = vpop.permute.xlu0 %784 }
 0x111   : > { %4489 = vst [vmem:[#allocation61_spill] sm:$0xff] %v3396_v59  ;;  %970 = vrot.lane.b32.xlu1 %v3000_v11, %s2529_s6 }
 0x112   : > { %1060 = vrot.lane.b32.xlu0 %v3062_v14, %s2530_s11 }
 0x113   : > { %v3402_v34 = vpop.permute.xlu1 %782 }
 0x114   : > { %4490 = vst [vmem:[#allocation62_spill] sm:$0xff] %v3402_v34  ;;  %v3404_v28 = vpop.permute.xlu0 %788 }
 0x115   : > { %4491 = vst [vmem:[#allocation63_spill] sm:$0xff] %v3404_v28  ;;  %1030 = vrot.lane.b32.xlu1 %v2922_v41, %s2530_s11 }
 0x116   : > { %1096 = vrot.lane.b32.xlu0 %v3152_v51, %s2531_s23 }
 0x117   : > { %v3410_v37 = vpop.permute.xlu1 %786 }
 0x118   : > { %4492 = vst [vmem:[#allocation64_spill] sm:$0xff] %v3410_v37  ;;  %v3412_v1 = vpop.permute.xlu0 %792 }
 0x119   : > { %4493 = vst [vmem:[#allocation65_spill] sm:$0xff] %v3412_v1  ;;  %1062 = vrot.lane.b32.xlu1 %v3053_v38, %s2530_s11 }
 0x11a   : > { %1128 = vrot.lane.b32.xlu0 %v3226_v27, %s2531_s23 }
 0x11b   : > { %v3418_v14 = vpop.permute.xlu1 %790 }
 0x11c   : > { %4494 = vst [vmem:[#allocation66_spill] sm:$0xff] %v3418_v14  ;;  %v3420_v59 = vpop.permute.xlu0 %796 }
 0x11d   : > { %4495 = vst [vmem:[#allocation67_spill] sm:$0xff] %v3420_v59  ;;  %1098 = vrot.lane.b32.xlu1 %v3146_v40, %s2531_s23 }
 0x11e   : > { %1164 = vrot.lane.b32.xlu0 %v2892_v7, %s2532_s29 }
 0x11f   : > { %v3426_v51 = vpop.permute.xlu1 %794 }
 0x120   : > { %4496 = vst [vmem:[#allocation68_spill] sm:$0xff] %v3426_v51  ;;  %v3428_v28 = vpop.permute.xlu0 %864 }
 0x121   : > { %1130 = vrot.lane.b32.xlu1 %v3219_v46, %s2531_s23 }
 0x122   : > { %1196 = vrot.lane.b32.xlu0 %v3000_v11, %s2532_s29 }
 0x123   : > { %v3434_v27 = vpop.permute.xlu1 %798 }
 0x124   : > { %4497 = vst [vmem:[#allocation69_spill] sm:$0xff] %v3434_v27  ;;  %v3436_v1 = vpop.permute.xlu0 %868 }
 0x125   : > { %1166 = vrot.lane.b32.xlu1 %v2903_v21, %s2532_s29 }
 0x126   : > { %1256 = vrot.lane.b32.xlu0 %v2922_v41, %s2533_s5 }
 0x127   : > { %v3442_v59 = vpop.permute.xlu1 %866 }
 0x128   : > { %v3444_v51 = vpop.permute.xlu0 %872 }
 0x129   : > { %4498 = vst [vmem:[#allocation70_spill] sm:$0xff] %v3444_v51  ;;  %1198 = vrot.lane.b32.xlu1 %v3025_v55, %s2532_s29 }
 0x12a   : > { %1288 = vrot.lane.b32.xlu0 %v3053_v38, %s2533_s5 }
 0x12b   : > { %v3450_v14 = vpop.permute.xlu1 %870 }
 0x12c   : > { %v3452_v27 = vpop.permute.xlu0 %876 }
 0x12d   : > { %4499 = vst [vmem:[#allocation71_spill] sm:$0xff] %v3452_v27  ;;  %1258 = vrot.lane.b32.xlu1 %v2934_v53, %s2533_s5 }
 0x12e   : > { %940 = vrot.lane.b32.xlu0 %v2903_v21, %s2529_s6 }
 0x12f   : > { %v3458_v41 = vpop.permute.xlu1 %874 }
 0x130   : > { %4500 = vst [vmem:[#allocation72_spill] sm:$0xff] %v3458_v41  ;;  %v3460_v37 = vpop.permute.xlu0 %880 }
 0x131   : > { %4501 = vst [vmem:[#allocation73_spill] sm:$0xff] %v3460_v37  ;;  %1290 = vrot.lane.b32.xlu1 %v3074_v5, %s2533_s5 }
 0x132   : > { %972 = vrot.lane.b32.xlu0 %v3025_v55, %s2529_s6  ;;  %v409_v55 = vld [vmem:[#allocation2 + $0x88] sm:$0x3] }
 0x133   : > { %v3466_v38 = vpop.permute.xlu1 %878 }
 0x134   : > { %4502 = vst [vmem:[#allocation74_spill] sm:$0xff] %v3466_v38  ;;  %v3468_v34 = vpop.permute.xlu0 %884 }
 0x135   : > { %4503 = vst [vmem:[#allocation75_spill] sm:$0xff] %v3468_v34  ;;  %942 = vrot.lane.b32.xlu1 %v2905_v25, %s2529_s6 }
 0x136   : > { %1032 = vrot.lane.b32.xlu0 %v2934_v53, %s2530_s11 }
 0x137   : > { %v3474_v27 = vpop.permute.xlu1 %882 }
 0x138   : > { %4504 = vst [vmem:[#allocation76_spill] sm:$0xff] %v3474_v27  ;;  %v3476_v17 = vpop.permute.xlu0 %888 }
 0x139   : > { %4505 = vst [vmem:[#allocation77_spill] sm:$0xff] %v3476_v17  ;;  %974 = vrot.lane.b32.xlu1 %v3006_v8, %s2529_s6 }
 0x13a   : > { %1064 = vrot.lane.b32.xlu0 %v3074_v5, %s2530_s11 }
 0x13b   : > { %v3482_v37 = vpop.permute.xlu1 %886 }
 0x13c   : > { %4506 = vst [vmem:[#allocation78_spill] sm:$0xff] %v3482_v37  ;;  %v3484_v38 = vpop.permute.xlu0 %892 }
 0x13d   : > { %4507 = vst [vmem:[#allocation79_spill] sm:$0xff] %v3484_v38  ;;  %1034 = vrot.lane.b32.xlu1 %v2948_v0, %s2530_s11 }
 0x13e   : > { %1100 = vrot.lane.b32.xlu0 %v3162_v4, %s2531_s23 }
 0x13f   : > { %v3490_v53 = vpop.permute.xlu1 %890 }
 0x140   : > { %4508 = vst [vmem:[#allocation80_spill] sm:$0xff] %v3490_v53  ;;  %v3492_v34 = vpop.permute.xlu0 %896 }
 0x141   : > { %1066 = vrot.lane.b32.xlu1 %v3069_v6, %s2530_s11 }
 0x142   : > { %1132 = vrot.lane.b32.xlu0 %v3243_v54, %s2531_s23 }
 0x143   : > { %v3498_v5 = vpop.permute.xlu1 %894 }
 0x144   : > { %4509 = vst [vmem:[#allocation81_spill] sm:$0xff] %v3498_v5  ;;  %v3500_v17 = vpop.permute.xlu0 %900 }
 0x145   : > { %4510 = vst [vmem:[#allocation82_spill] sm:$0xff] %v3500_v17  ;;  %1102 = vrot.lane.b32.xlu1 %v3157_v52, %s2531_s23 }
 0x146   : > { %1168 = vrot.lane.b32.xlu0 %v2905_v25, %s2532_s29 }
 0x147   : > { %v3506_v38 = vpop.permute.xlu1 %898 }
 0x148   : > { %v3508_v53 = vpop.permute.xlu0 %904 }
 0x149   : > { %4511 = vst [vmem:[#allocation83_spill] sm:$0xff] %v3508_v53  ;;  %1134 = vrot.lane.b32.xlu1 %v3232_v24, %s2531_s23 }
 0x14a   : > { %1200 = vrot.lane.b32.xlu0 %v3006_v8, %s2532_s29 }
 0x14b   : > { %v3514_v37 = vpop.permute.xlu1 %902 }
 0x14c   : > { %4512 = vst [vmem:[#allocation84_spill] sm:$0xff] %v3514_v37  ;;  %v3516_v5 = vpop.permute.xlu0 %908  ;;  %v451_v37 = vld [vmem:[#allocation2 + $0x1d8] sm:$0x3] }
 0x14d   : > { %4513 = vst [vmem:[#allocation85_spill] sm:$0xff] %v3516_v5  ;;  %1170 = vrot.lane.b32.xlu1 %v2907_v26, %s2532_s29  ;;  %v408_v5 = vld [vmem:[#allocation2 + $0x80] sm:$0xff] }
 0x14e   : > { %1260 = vrot.lane.b32.xlu0 %v2948_v0, %s2533_s5 }
 0x14f   : > { %v3522_v27 = vpop.permute.xlu1 %906 }
 0x150   : > { %4514 = vst [vmem:[#allocation86_spill] sm:$0xff] %v3522_v27  ;;  %v3524_v25 = vpop.permute.xlu0 %932  ;;  %v3540_v27 = vpack.c.bf16 %v409_v55, %v408_v5 }
 0x151   : > { %1202 = vrot.lane.b32.xlu1 %v3049_v31, %s2532_s29 }
 0x152   : > { %1292 = vrot.lane.b32.xlu0 %v3069_v6, %s2533_s5  ;;  %4516 = vst [vmem:[#allocation88_spill] sm:$0xff] %v3540_v27  ;;  %v449_v6 = vld [vmem:[#allocation2 + $0x1c8] sm:$0x3]  ;;  %v997_v55 = vshrl.u32 %v3540_v27, 16 }
 0x153   : > { %v3530_v8 = vpop.permute.xlu1 %910  ;;  %v3551_v51 = vpack.c.bf16 %v449_v6, %v448_v3 }
 0x154   : > { %4515 = vst [vmem:[#allocation87_spill] sm:$0xff] %v3530_v8  ;;  %v3532_v53 = vpop.permute.xlu0 %964  ;;  %v999_v8 = vshll.u32 %v3540_v27, 16 }
 0x155   : > { %1262 = vrot.lane.b32.xlu1 %v2956_v12, %s2533_s5  ;;  %v1013_v21 = vshll.u32 %v3551_v51, 16  ;;  %v1011_v6 = vshrl.u32 %v3551_v51, 16  ;;  %v4428_v60 = vrot.slane %v3551_v51, 1 }
 0x156   : > { %944 = vrot.lane.b32.xlu0 %v2907_v26, %s2529_s6  ;;  %v1001_v5 = vrot.slane %v999_v8, 1 }
 0x157   : > { %v3538_v0 = vpop.permute.xlu1 %934 }
 0x158   : > { %v3542_v11 = vpop.permute.xlu0 %1024  ;;  %v1002_v3 = vor.u32 %v1001_v5, %v997_v55  ;;  %v411_v55 = vld [vmem:[#allocation2 + $0x98] sm:$0x3] }
 0x159   : > { %1294 = vrot.lane.b32.xlu1 %v3091_v9, %s2533_s5 }
 0x15a   : > { %976 = vrot.lane.b32.xlu0 %v3049_v31, %s2529_s6  ;;  %v1015_v31 = vrot.slane %v1013_v21, 1  ;;  %v4424_v21 = vrot.slane %v3540_v27, 1 }
 0x15b   : > { %v3549_v41 = vpop.permute.xlu1 %966 }
 0x15c   : > { %v3553_v26 = vpop.permute.xlu0 %1056  ;;  %v3571_v49 = vor.u32 %v1015_v31, %v1011_v6 }
 0x15d   : > { %946 = vrot.lane.b32.xlu1 %v3540_v27, %s2529_s6 }
 0x15e   : > { %1036 = vrot.lane.b32.xlu0 %v2956_v12, %s2530_s11 }
 0x15f   : > { %v1027_v7 = vpop.permute.xlu1 %1026 }
 0x160   : > { %v1093_v10 = vpop.permute.xlu0 %1092 }
 0x161   : > { %978 = vrot.lane.b32.xlu1 %v3551_v51, %s2529_s6 }
 0x162   : > { %1068 = vrot.lane.b32.xlu0 %v3091_v9, %s2530_s11  ;;  %v3580_v9 = vpack.c.bf16 %v411_v55, %v410_v2 }
 0x163   : > { %v3566_v23 = vpop.permute.xlu1 %1058 }
 0x164   : > { %v3568_v8 = vpop.permute.xlu0 %1124  ;;  %v1227_v6 = vshll.u32 %v3580_v9, 16  ;;  %v1225_v2 = vshrl.u32 %v3580_v9, 16 }
 0x165   : > { %1038 = vrot.lane.b32.xlu1 %v1002_v3, %s2530_s11 }
 0x166   : > { %1104 = vrot.lane.b32.xlu0 %v3170_v33, %s2531_s23  ;;  %v450_v33 = vld [vmem:[#allocation2 + $0x1d0] sm:$0xff]  ;;  %v1229_v55 = vrot.slane %v1227_v6, 1 }
 0x167   : > { %v1095_v12 = vpop.permute.xlu1 %1094  ;;  %v3601_v43 = vpack.c.bf16 %v451_v37, %v450_v33 }
 0x168   : > { %v1161_v5 = vpop.permute.xlu0 %1160 }
 0x169   : > { %1070 = vrot.lane.b32.xlu1 %v3571_v49, %s2530_s11  ;;  %v1241_v33 = vshll.u32 %v3601_v43, 16 }
 0x16a   : > { %1136 = vrot.lane.b32.xlu0 %v3255_v63, %s2531_s23 }
 0x16b   : > { %v1127_v24 = vpop.permute.xlu1 %1126 }
 0x16c   : > { %v1193_v31 = vpop.permute.xlu0 %1192 }
 0x16d   : > { %1106 = vrot.lane.b32.xlu1 %v4424_v21, %s2531_s23  ;;  %v1321_v21 = vsel %vm195_vm0, %v2843_v15, %v3260_v20  ;;  %v1230_v20 = vor.u32 %v1229_v55, %v1225_v2 }
 0x16e   : > { %1172 = vrot.lane.b32.xlu0 %v3540_v27, %s2532_s29  ;;  %v1323_v27 = vsel %vm195_vm0, %v2886_v61, %v3287_v16  ;;  %v1386_v6 = vsel %vm1384_vm3, %v1321_v21, %v3428_v28  ;;  %v1353_v28 = vsel %vm195_vm0, %v2912_v35, %v3364_v50  ;;  %v2321_v35 = vcombine.low %v3146_v40, %v3162_v4 }
 0x16f   : > { %v1163_v52 = vpop.permute.xlu1 %1162  ;;  %v1451_v15 = vsel %vm1449_vm4, %v1386_v6, %v3524_v25  ;;  %v1239_v25 = vshrl.u32 %v3601_v43, 16 }
 0x170   : > { %v1253_v63 = vpop.permute.xlu0 %1252 }
 0x171   : > { %1138 = vrot.lane.b32.xlu1 %v4428_v60, %s2531_s23  ;;  %v1388_v60 = vsel %vm1384_vm3, %v1323_v27, %v3442_v59  ;;  %v1516_v59 = vsel %vm1514_vm5, %v1451_v15, %v3542_v11  ;;  %v857_v15 = vrot.slane %v3065_v22, 1 }
 0x172   : > { %1204 = vrot.lane.b32.xlu0 %v3551_v51, %s2532_s29  ;;  %v1453_v61 = vsel %vm1449_vm4, %v1388_v60, %v3538_v0  ;;  %v1355_v60 = vsel %vm195_vm0, %v2985_v57, %v3378_v29  ;;  %v1581_v27 = vsel %vm1579_vm6, %v1516_v59, %v1093_v10 }
 0x173   : > { %v1195_v17 = vpop.permute.xlu1 %1194  ;;  %v1518_v37 = vsel %vm1514_vm5, %v1453_v61, %v1027_v7  ;;  %v1418_v7 = vsel %vm1384_vm3, %v1353_v28, %v3492_v34  ;;  %v1420_v11 = vsel %vm1384_vm3, %v1355_v60, %v3506_v38  ;;  %v1646_v50 = vsel %vm1644_vm7, %v1581_v27, %v1161_v5  ;;  %v310_v61 = vld [vmem:[%s2639_s28 + $0x78] sm:$0xff]  ;;  %v4517_v60 = vld [vmem:[#allocation26_spill] sm:$0xff] }
 0x174   : > { %v1285_v16 = vpop.permute.xlu0 %1284  ;;  %v1583_v0 = vsel %vm1579_vm6, %v1518_v37, %v1095_v12  ;;  %v1483_v10 = vsel %vm1449_vm4, %v1418_v7, %v3532_v53  ;;  %v1485_v29 = vsel %vm1449_vm4, %v1420_v11, %v3549_v41  ;;  %v1243_v53 = vrot.slane %v1241_v33, 1 }
 0x175   : > { %1174 = vrot.lane.b32.xlu1 %v3580_v9, %s2532_s29  ;;  %v1648_v21 = vsel %vm1644_vm7, %v1583_v0, %v1163_v52  ;;  %v1548_v34 = vsel %vm1514_vm5, %v1483_v10, %v3553_v26  ;;  %v1550_v38 = vsel %vm1514_vm5, %v1485_v29, %v3566_v23  ;;  %v856_v12 = vrot.slane %v3027_v58, 1 }
 0x176   : > { %1264 = vrot.lane.b32.xlu0 %v1002_v3, %s2533_s5  ;;  %v1711_v3 = vsel %vm1709_vm8, %v1646_v50, %v1253_v63  ;;  %v1613_v41 = vsel %vm1579_vm6, %v1548_v34, %v3568_v8  ;;  %v1615_v63 = vsel %vm1579_vm6, %v1550_v38, %v1127_v24  ;;  %v1244_v8 = vor.u32 %v1243_v53, %v1239_v25 }
 0x177   : > { %v1255_v57 = vpop.permute.xlu1 %1254  ;;  %v1678_v26 = vsel %vm1644_vm7, %v1613_v41, %v1193_v31  ;;  %v1680_v5 = vsel %vm1644_vm7, %v1615_v63, %v1195_v17  ;;  %v4519_v7 = vrot.slane %v2930_v48, 1  ;;  %v1327_v10 = vsel %vm195_vm0, %v2888_v62, %v3295_v36 }
 0x178   : > { %v1713_v40 = vsel %vm1709_vm8, %v1648_v21, %v1255_v57  ;;  %v3641_v4 = vpop.permute.xlu0 %936  ;;  %v1743_v2 = vsel %vm1709_vm8, %v1678_v26, %v1285_v16  ;;  %v1325_v57 = vsel %vm195_vm0, %v2881_v56, %v3282_v39  ;;  %v1357_v62 = vsel %vm195_vm0, %v2980_v44, %v3372_v45  ;;  %v4521_v44 = vld [vmem:[#allocation28_spill] sm:$0xff]  ;;  %v4523_v26 = vld [vmem:[#allocation38_spill] sm:$0xff] }
 0x179   : > { %v2318_v52 = vcombine.low %v1711_v3, %v1713_v40  ;;  %1206 = vrot.lane.b32.xlu1 %v3601_v43, %s2532_s29  ;;  %v1390_v29 = vsel %vm1384_vm3, %v1325_v57, %v3436_v1  ;;  %v1392_v3 = vsel %vm1384_vm3, %v1327_v10, %v3450_v14  ;;  %v1359_v39 = vsel %vm195_vm0, %v3004_v19, %v3386_v13  ;;  %v4520_v14 = vld [vmem:[#allocation82_spill] sm:$0xff]  ;;  %v4522_v19 = vld [vmem:[#allocation84_spill] sm:$0xff]  ;;  %v4529_v57 = vld [vmem:[#allocation33_spill] sm:$0xff] }
 0x17a   : > { %1296 = vrot.lane.b32.xlu0 %v3571_v49, %s2533_s5  ;;  %v2337_v49 = vcombine.low %v3219_v46, %v3243_v54  ;;  %v342_v46 = vmax.f32 %v310_v61, 0.0  ;;  %v1455_v34 = vsel %vm1449_vm4, %v1390_v29, %v3641_v4  ;;  %v1422_v4 = vsel %vm1384_vm3, %v1357_v62, %v4520_v14  ;;  %v4525_v61 = vld [vmem:[#allocation12_spill] sm:$0xff] }
 0x17b   : > { %v1287_v23 = vpop.permute.xlu1 %1286  ;;  %2078 = vmatmul.mubr.bf16.vlgmr.msra.gmra.mrb[0].mxu0 %v2318_v52  ;;  %v3731_v45 = vrot.slane %v4521_v44, 1  ;;  %v1424_v13 = vsel %vm1384_vm3, %v1359_v39, %v4522_v19  ;;  %v4536_v19 = vld [vmem:[#allocation7_spill] sm:$0xff] }
 0x17c   : > { %v1745_v55 = vsel %vm1709_vm8, %v1680_v5, %v1287_v23  ;;  %v3659_v6 = vpop.permute.xlu0 %968  ;;  %2360 = vmatprep.mubr.msk.bf16.mxu0 %vm195_vm0, %v2321_v35  ;;  %375 = vst.msk [vmem:[#allocation2 + $0x121] sm:$0xff] %vm195_vm0, %v342_v46  ;;  %v4518_v35 = vld [vmem:[#allocation15_spill] sm:$0xff]  ;;  %v4524_v5 = vld [vmem:[#allocation37_spill] sm:$0xff] }
 0x17d   : > { %v2334_v24 = vcombine.low %v1743_v2, %v1745_v55  ;;  %1266 = vrot.lane.b32.xlu1 %v1230_v20, %s2533_s5  ;;  %v326_v20 = vld [vmem:[%s2639_s28 + $0xf8] sm:$0xff]  ;;  %v2323_v23 = vcombine.low %v4524_v5, %v4523_v26  ;;  %v1487_v2 = vsel %vm1449_vm4, %v1422_v4, %v3659_v6  ;;  %v4539_v26 = vld [vmem:[#allocation70_spill] sm:$0xff]  ;;  %s2315_s28 = sshll.u32 %s2305_s16, 5 }
 0x17e   : > { %912 = vrot.lane.b32.xlu0 %v856_v12, %s2527_s27  ;;  %v358_v33 = vmax.f32 %v326_v20, 0.0  ;;  %p189_p7 = scmp.lt.s32.totalorder %s2315_s28, 63 }
 0x17f   : > { %v939_v17 = vpop.permute.xlu1 %938  ;;  %2142 = vmatmul.mubr.bf16.vlgmr.msra.gmra.mrb[0].mxu1 %v2334_v24 }
 0x180   : > { %v1029_v31 = vpop.permute.xlu0 %1028  ;;  %2368 = vmatprep.mubr.msk.bf16.mxu1 %vm195_vm0, %v2337_v49  ;;  %391 = vst.msk [vmem:[#allocation2 + $0x261] sm:$0xff] %vm195_vm0, %v358_v33  ;;  %v1457_v38 = vsel %vm1449_vm4, %v1392_v3, %v939_v17  ;;  %s4608_s28 = smov (!%p189_p7, %s2315_s28), 63 }
 0x181   : > { %1298 = vrot.lane.b32.xlu1 %v1244_v8, %s2533_s5  ;;  %v1520_v36 = vsel %vm1514_vm5, %v1455_v34, %v1029_v31  ;;  %s2316_s15 = sshll.u32 %s4608_s28, 3 }
 0x182   : > { %948 = vrot.lane.b32.xlu0 %v2930_v48, %s2529_s6  ;;  %s4152_s8 = scalar_lea.vmem %s4355_s3, %s2316_s15 }
 0x183   : > { %v971_v54 = vpop.permute.xlu1 %970 }
 0x184   : > { %v1061_v16 = vpop.permute.xlu0 %1060  ;;  %v1489_v55 = vsel %vm1449_vm4, %v1424_v13, %v971_v54 }
 0x185   : > { %914 = vrot.lane.b32.xlu1 %v857_v15, %s2527_s27  ;;  %v1552_v17 = vsel %vm1514_vm5, %v1487_v2, %v1061_v16 }
 0x186   : > { %980 = vrot.lane.b32.xlu0 %v3065_v22, %s2529_s6 }
 0x187   : > { %v1031_v28 = vpop.permute.xlu1 %1030 }
 0x188   : > { %v1097_v59 = vpop.permute.xlu0 %1096  ;;  %v1522_v1 = vsel %vm1514_vm5, %v1457_v38, %v1031_v28 }
 0x189   : > { %950 = vrot.lane.b32.xlu1 %v2928_v47, %s2529_s6  ;;  %v1585_v52 = vsel %vm1579_vm6, %v1520_v36, %v1097_v59  ;;  %v4532_v36 = vld [vmem:[#allocation17_spill] sm:$0xff] }
 0x18a   : > { %1040 = vrot.lane.b32.xlu0 %v2972_v32, %s2530_s11 }
 0x18b   : > { %v1063_v37 = vpop.permute.xlu1 %1062 }
 0x18c   : > { %v1129_v25 = vpop.permute.xlu0 %1128  ;;  %v1554_v31 = vsel %vm1514_vm5, %v1489_v55, %v1063_v37 }
 0x18d   : > { %982 = vrot.lane.b32.xlu1 %v4517_v60, %s2529_s6  ;;  %v1617_v6 = vsel %vm1579_vm6, %v1552_v17, %v1129_v25  ;;  %v4527_v25 = vld [vmem:[#allocation44_spill] sm:$0xff] }
 0x18e   : > { %1072 = vrot.lane.b32.xlu0 %v3104_v30, %s2530_s11  ;;  %v3697_v30 = vrot.slane %v4517_v60, 1  ;;  %v4542_v17 = vld [vmem:[#allocation20_spill] sm:$0xff] }
 0x18f   : > { %v1099_v27 = vpop.permute.xlu1 %1098 }
 0x190   : > { %v1165_v0 = vpop.permute.xlu0 %1164  ;;  %v1587_v53 = vsel %vm1579_vm6, %v1522_v1, %v1099_v27  ;;  %v2343_v46 = vcombine.low %v3697_v30, %v3731_v45  ;;  %v4526_v27 = vld [vmem:[#allocation45_spill] sm:$0xff]  ;;  %v4533_v1 = vld [vmem:[#allocation40_spill] sm:$0xff] }
 0x191   : > { %1042 = vrot.lane.b32.xlu1 %v4518_v35, %s2530_s11  ;;  %v1650_v41 = vsel %vm1644_vm7, %v1585_v52, %v1165_v0  ;;  %v2339_v0 = vcombine.low %v4527_v25, %v4526_v27  ;;  %v4534_v52 = vld [vmem:[#allocation32_spill] sm:$0xff]  ;;  %v4545_v27 = vld [vmem:[#allocation39_spill] sm:$0xff] }
 0x192   : > { %1108 = vrot.lane.b32.xlu0 %v4519_v7, %s2531_s23  ;;  %v4546_v25 = vld [vmem:[#allocation83_spill] sm:$0xff] }
 0x193   : > { %v1131_v11 = vpop.permute.xlu1 %1130 }
 0x194   : > { %v1197_v50 = vpop.permute.xlu0 %1196  ;;  %v1619_v54 = vsel %vm1579_vm6, %v1554_v31, %v1131_v11 }
 0x195   : > { %1074 = vrot.lane.b32.xlu1 %v3097_v18, %s2530_s11  ;;  %v1682_v20 = vsel %vm1644_vm7, %v1617_v6, %v1197_v50  ;;  %v4528_v50 = vld [vmem:[#allocation18_spill] sm:$0xff] }
 0x196   : > { %1140 = vrot.lane.b32.xlu0 %v857_v15, %s2531_s23 }
 0x197   : > { %v1167_v32 = vpop.permute.xlu1 %1166 }
 0x198   : > { %v1257_v21 = vpop.permute.xlu0 %1256  ;;  %v1652_v63 = vsel %vm1644_vm7, %v1587_v53, %v1167_v32  ;;  %v4535_v53 = vld [vmem:[#allocation47_spill] sm:$0xff] }
 0x199   : > { %1110 = vrot.lane.b32.xlu1 %v3174_v42, %s2531_s23  ;;  %v1715_v49 = vsel %vm1709_vm8, %v1650_v41, %v1257_v21  ;;  %v1329_v13 = vsel %vm195_vm0, %v4536_v19, %v4535_v53  ;;  %v4537_v41 = vld [vmem:[#allocation48_spill] sm:$0xff] }
 0x19a   : > { %1176 = vrot.lane.b32.xlu0 %v2928_v47, %s2532_s29  ;;  %v1394_v5 = vsel %vm1384_vm3, %v1329_v13, %v4539_v26  ;;  %v4548_v53 = vld [vmem:[#allocation88_spill] sm:$0xff] }
 0x19b   : > { %v1199_v40 = vpop.permute.xlu1 %1198  ;;  %v4549_v19 = vrot.slane %v4548_v53, 1 }
 0x19c   : > { %v1289_v56 = vpop.permute.xlu0 %1288  ;;  %v1684_v16 = vsel %vm1644_vm7, %v1619_v54, %v1199_v40  ;;  %v4530_v40 = vld [vmem:[#allocation11_spill] sm:$0xff] }
 0x19d   : > { %1142 = vrot.lane.b32.xlu1 %v3697_v30, %s2531_s23  ;;  %v1747_v28 = vsel %vm1709_vm8, %v1682_v20, %v1289_v56  ;;  %v4531_v56 = vld [vmem:[#allocation27_spill] sm:$0xff]  ;;  %v4543_v20 = vld [vmem:[#allocation60_spill] sm:$0xff] }
 0x19e   : > { %1208 = vrot.lane.b32.xlu0 %v4517_v60, %s2532_s29 }
 0x19f   : > { %v1259_v12 = vpop.permute.xlu1 %1258 }
 0x1a0   : > { %v1717_v24 = vsel %vm1709_vm8, %v1652_v63, %v1259_v12  ;;  %v941_v8 = vpop.permute.xlu0 %940  ;;  %v4538_v63 = vld [vmem:[#allocation8_spill] sm:$0xff] }
 0x1a1   : > { %v2320_v15 = vcombine.low %v1715_v49, %v1717_v24  ;;  %1178 = vrot.lane.b32.xlu1 %v4525_v61, %s2532_s29  ;;  %v1331_v12 = vsel %vm195_vm0, %v4538_v63, %v4537_v41  ;;  %v1316_v49 = vrot.slane %v3580_v9, 1  ;;  %v4541_v24 = vld [vmem:[#allocation58_spill] sm:$0xff]  ;;  %v3818_v9 = vrot.slane %v4531_v56, 1 }
 0x1a2   : > { %1268 = vrot.lane.b32.xlu0 %v4518_v35, %s2533_s5  ;;  %v1361_v31 = vsel %vm195_vm0, %v4542_v17, %v4541_v24  ;;  %v1318_v41 = vrot.slane %v3601_v43, 1 }
 0x1a3   : > { %v1291_v33 = vpop.permute.xlu1 %1290  ;;  %2086 = vmatmul.mubr.bf16.gmra.mrb[4].mxu0 %v2320_v15  ;;  %v1459_v15 = vsel %vm1449_vm4, %v1394_v5, %v941_v8  ;;  %v1426_v8 = vsel %vm1384_vm3, %v1361_v31, %v4546_v25  ;;  %v2325_v13 = vcombine.low %v4549_v19, %v1316_v49  ;;  %v4555_v25 = vld [vmem:[#allocation13_spill] sm:$0xff]  ;;  %v4560_v19 = vld [vmem:[#allocation50_spill] sm:$0xff] }
 0x1a4   : > { %v1749_v59 = vsel %vm1709_vm8, %v1684_v16, %v1291_v33  ;;  %v973_v37 = vpop.permute.xlu0 %972  ;;  %2361 = vmatprep.mubr.msk.bf16.mxu0 %vm195_vm0, %v2323_v23  ;;  %v4540_v23 = vld [vmem:[#allocation72_spill] sm:$0xff]  ;;  %v4544_v16 = vld [vmem:[#allocation23_spill] sm:$0xff] }
 0x1a5   : > { %v2336_v7 = vcombine.low %v1747_v28, %v1749_v59  ;;  %1210 = vrot.lane.b32.xlu1 %v4521_v44, %s2532_s29  ;;  %v1396_v2 = vsel %vm1384_vm3, %v1331_v12, %v4540_v23  ;;  %v1363_v33 = vsel %vm195_vm0, %v4544_v16, %v4543_v20  ;;  %v1491_v63 = vsel %vm1449_vm4, %v1426_v8, %v973_v37  ;;  %v4554_v16 = vld [vmem:[#allocation35_spill] sm:$0xff] }
 0x1a6   : > { %1300 = vrot.lane.b32.xlu0 %v3097_v18, %s2533_s5 }
 0x1a7   : > { %v943_v35 = vpop.permute.xlu1 %942  ;;  %2150 = vmatmul.mubr.bf16.gmra.mrb[4].mxu1 %v2336_v7 }
 0x1a8   : > { %v1033_v11 = vpop.permute.xlu0 %1032  ;;  %2369 = vmatprep.mubr.msk.bf16.mxu1 %vm195_vm0, %v2339_v0  ;;  %v1461_v6 = vsel %vm1449_vm4, %v1396_v2, %v943_v35  ;;  %v4547_v0 = vld [vmem:[#allocation86_spill] sm:$0xff] }
 0x1a9   : > { %1270 = vrot.lane.b32.xlu1 %v4528_v50, %s2533_s5  ;;  %v1524_v28 = vsel %vm1514_vm5, %v1459_v15, %v1033_v11  ;;  %v1428_v7 = vsel %vm1384_vm3, %v1363_v33, %v4547_v0 }
 0x1aa   : > { %916 = vrot.lane.b32.xlu0 %v3697_v30, %s2527_s27 }
 0x1ab   : > { %v975_v32 = vpop.permute.xlu1 %974 }
 0x1ac   : > { %v1065_v21 = vpop.permute.xlu0 %1064  ;;  %v1493_v12 = vsel %vm1449_vm4, %v1428_v7, %v975_v32  ;;  %v4556_v7 = vld [vmem:[#allocation29_spill] sm:$0xff] }
 0x1ad   : > { %1302 = vrot.lane.b32.xlu1 %v4529_v57, %s2533_s5  ;;  %v1556_v5 = vsel %vm1514_vm5, %v1491_v63, %v1065_v21  ;;  %v4550_v21 = vld [vmem:[#allocation30_spill] sm:$0xff] }
 0x1ae   : > { %952 = vrot.lane.b32.xlu0 %v4525_v61, %s2529_s6  ;;  %v3848_v2 = vrot.slane %v4550_v21, 1  ;;  %v4562_v63 = vld [vmem:[#allocation42_spill] sm:$0xff] }
 0x1af   : > { %v1035_v18 = vpop.permute.xlu1 %1034 }
 0x1b0   : > { %v1101_v10 = vpop.permute.xlu0 %1100  ;;  %v1526_v59 = vsel %vm1514_vm5, %v1461_v6, %v1035_v18 }
 0x1b1   : > { %918 = vrot.lane.b32.xlu1 %v3731_v45, %s2527_s27  ;;  %v1589_v35 = vsel %vm1579_vm6, %v1524_v28, %v1101_v10 }
 0x1b2   : > { %984 = vrot.lane.b32.xlu0 %v4521_v44, %s2529_s6 }
 0x1b3   : > { %v1067_v29 = vpop.permute.xlu1 %1066 }
 0x1b4   : > { %v1133_v3 = vpop.permute.xlu0 %1132 }
 0x1b5   : > { %954 = vrot.lane.b32.xlu1 %v4530_v40, %s2529_s6  ;;  %v1621_v23 = vsel %vm1579_vm6, %v1556_v5, %v1133_v3  ;;  %v4551_v3 = vrot.slane %v3551_v51, 1 }
 0x1b6   : > { %1044 = vrot.lane.b32.xlu0 %v4528_v50, %s2530_s11 }
 0x1b7   : > { %v1103_v34 = vpop.permute.xlu1 %1102 }
 0x1b8   : > { %v1169_v38 = vpop.permute.xlu0 %1168  ;;  %v1591_v50 = vsel %vm1579_vm6, %v1526_v59, %v1103_v34 }
 0x1b9   : > { %986 = vrot.lane.b32.xlu1 %v4531_v56, %s2529_s6  ;;  %v1654_v11 = vsel %vm1644_vm7, %v1589_v35, %v1169_v38  ;;  %v1558_v38 = vsel %vm1514_vm5, %v1493_v12, %v1067_v29  ;;  %v4563_v12 = vld [vmem:[#allocation71_spill] sm:$0xff] }
 0x1ba   : > { %1076 = vrot.lane.b32.xlu0 %v4529_v57, %s2530_s11 }
 0x1bb   : > { %v1135_v62 = vpop.permute.xlu1 %1134 }
 0x1bc   : > { %v1201_v39 = vpop.permute.xlu0 %1200  ;;  %v1623_v43 = vsel %vm1579_vm6, %v1558_v38, %v1135_v62  ;;  %v2341_v62 = vcombine.low %v4551_v3, %v1318_v41  ;;  %v4567_v3 = vld [vmem:[#allocation34_spill] sm:$0xff] }
 0x1bd   : > { %1046 = vrot.lane.b32.xlu1 %v4532_v36, %s2530_s11  ;;  %v1686_v37 = vsel %vm1644_vm7, %v1621_v23, %v1201_v39  ;;  %v4552_v39 = vld [vmem:[#allocation14_spill] sm:$0xff] }
 0x1be   : > { %1112 = vrot.lane.b32.xlu0 %v4533_v1, %s2531_s23 }
 0x1bf   : > { %v1171_v14 = vpop.permute.xlu1 %1170 }
 0x1c0   : > { %v1261_v4 = vpop.permute.xlu0 %1260  ;;  %v1656_v57 = vsel %vm1644_vm7, %v1591_v50, %v1171_v14 }
 0x1c1   : > { %1078 = vrot.lane.b32.xlu1 %v4534_v52, %s2530_s11  ;;  %v1719_v10 = vsel %vm1709_vm8, %v1654_v11, %v1261_v4  ;;  %v4557_v11 = vld [vmem:[#allocation19_spill] sm:$0xff] }
 0x1c2   : > { %1144 = vrot.lane.b32.xlu0 %v3731_v45, %s2531_s23 }
 0x1c3   : > { %v1203_v55 = vpop.permute.xlu1 %1202 }
 0x1c4   : > { %v1293_v54 = vpop.permute.xlu0 %1292  ;;  %v1688_v32 = vsel %vm1644_vm7, %v1623_v43, %v1203_v55  ;;  %v2345_v55 = vcombine.low %v3818_v9, %v3848_v2 }
 0x1c5   : > { %1114 = vrot.lane.b32.xlu1 %v4545_v27, %s2531_s23  ;;  %v1751_v29 = vsel %vm1709_vm8, %v1686_v37, %v1293_v54  ;;  %v4553_v54 = vld [vmem:[#allocation22_spill] sm:$0xff]  ;;  %v4565_v37 = vld [vmem:[#allocation59_spill] sm:$0xff] }
 0x1c6   : > { %1180 = vrot.lane.b32.xlu0 %v4530_v40, %s2532_s29 }
 0x1c7   : > { %v1263_v18 = vpop.permute.xlu1 %1262 }
 0x1c8   : > { %v1721_v34 = vsel %vm1709_vm8, %v1656_v57, %v1263_v18  ;;  %v945_v26 = vpop.permute.xlu0 %944  ;;  %v4558_v57 = vld [vmem:[#allocation49_spill] sm:$0xff] }
 0x1c9   : > { %v2322_v14 = vcombine.low %v1719_v10, %v1721_v34  ;;  %1146 = vrot.lane.b32.xlu1 %v3818_v9, %s2531_s23  ;;  %v4559_v18 = vld [vmem:[#allocation9_spill] sm:$0xff]  ;;  %v4564_v34 = vld [vmem:[#allocation74_spill] sm:$0xff] }
 0x1ca   : > { %1212 = vrot.lane.b32.xlu0 %v4531_v56, %s2532_s29  ;;  %v1333_v53 = vsel %vm195_vm0, %v4559_v18, %v4558_v57 }
 0x1cb   : > { %v1295_v4 = vpop.permute.xlu1 %1294  ;;  %2094 = vmatmul.mubr.bf16.gmra.mrb[8].mxu0 %v2322_v14  ;;  %v1398_v10 = vsel %vm1384_vm3, %v1333_v53, %v4563_v12 }
 0x1cc   : > { %v1753_v49 = vsel %vm1709_vm8, %v1688_v32, %v1295_v4  ;;  %v977_v24 = vpop.permute.xlu0 %976  ;;  %2362 = vmatprep.mubr.msk.bf16.mxu0 %vm195_vm0, %v2325_v13  ;;  %v4561_v13 = vld [vmem:[#allocation10_spill] sm:$0xff]  ;;  %v1463_v14 = vsel %vm1449_vm4, %v1398_v10, %v945_v26  ;;  %v4566_v32 = vld [vmem:[#allocation21_spill] sm:$0xff] }
 0x1cd   : > { %v2338_v17 = vcombine.low %v1751_v29, %v1753_v49  ;;  %1182 = vrot.lane.b32.xlu1 %v4552_v39, %s2532_s29  ;;  %v1335_v41 = vsel %vm195_vm0, %v4561_v13, %v4560_v19  ;;  %v1365_v4 = vsel %vm195_vm0, %v4566_v32, %v4565_v37  ;;  %v2327_v13 = vcombine.low %v3174_v42, %v4533_v1 }
 0x1ce   : > { %1272 = vrot.lane.b32.xlu0 %v4532_v36, %s2533_s5  ;;  %v1400_v5 = vsel %vm1384_vm3, %v1335_v41, %v4564_v34  ;;  %v3935_v42 = vrot.slane %v4556_v7, 1 }
 0x1cf   : > { %v947_v31 = vpop.permute.xlu1 %946  ;;  %2158 = vmatmul.mubr.bf16.gmra.mrb[8].mxu1 %v2338_v17  ;;  %v4569_v17 = vld [vmem:[#allocation25_spill] sm:$0xff] }
 0x1d0   : > { %v1037_v15 = vpop.permute.xlu0 %1036  ;;  %2370 = vmatprep.mubr.msk.bf16.mxu1 %vm195_vm0, %v2341_v62  ;;  %v1465_v23 = vsel %vm1449_vm4, %v1400_v5, %v947_v31  ;;  %v4568_v62 = vld [vmem:[#allocation62_spill] sm:$0xff] }
 0x1d1   : > { %1214 = vrot.lane.b32.xlu1 %v4550_v21, %s2532_s29  ;;  %v1528_v29 = vsel %vm1514_vm5, %v1463_v14, %v1037_v15  ;;  %v4571_v15 = vld [vmem:[#allocation87_spill] sm:$0xff] }
 0x1d2   : > { %1304 = vrot.lane.b32.xlu0 %v4534_v52, %s2533_s5 }
 0x1d3   : > { %v979_v51 = vpop.permute.xlu1 %978 }
 0x1d4   : > { %v1069_v6 = vpop.permute.xlu0 %1068 }
 0x1d5   : > { %1274 = vrot.lane.b32.xlu1 %v4553_v54, %s2533_s5 }
 0x1d6   : > { %920 = vrot.lane.b32.xlu0 %v3818_v9, %s2527_s27 }
 0x1d7   : > { %v1039_v36 = vpop.permute.xlu1 %1038 }
 0x1d8   : > { %v1105_v20 = vpop.permute.xlu0 %1104  ;;  %v1530_v49 = vsel %vm1514_vm5, %v1465_v23, %v1039_v36 }
 0x1d9   : > { %1306 = vrot.lane.b32.xlu1 %v4554_v16, %s2533_s5  ;;  %v1593_v31 = vsel %vm1579_vm6, %v1528_v29, %v1105_v20 }
 0x1da   : > { %956 = vrot.lane.b32.xlu0 %v4552_v39, %s2529_s6 }
 0x1db   : > { %v1071_v33 = vpop.permute.xlu1 %1070 }
 0x1dc   : > { %v1137_v28 = vpop.permute.xlu0 %1136 }
 0x1dd   : > { %922 = vrot.lane.b32.xlu1 %v3848_v2, %s2527_s27 }
 0x1de   : > { %988 = vrot.lane.b32.xlu0 %v4550_v21, %s2529_s6 }
 0x1df   : > { %v1107_v52 = vpop.permute.xlu1 %1106 }
 0x1e0   : > { %v1173_v59 = vpop.permute.xlu0 %1172  ;;  %v1595_v57 = vsel %vm1579_vm6, %v1530_v49, %v1107_v52 }
 0x1e1   : > { %958 = vrot.lane.b32.xlu1 %v4555_v25, %s2529_s6  ;;  %v1658_v18 = vsel %vm1644_vm7, %v1593_v31, %v1173_v59  ;;  %v468_v31 = vld [vmem:[#allocation2 + $0x260] sm:$0xff] }
 0x1e2   : > { %1048 = vrot.lane.b32.xlu0 %v4553_v54, %s2530_s11  ;;  %v1367_v54 = vsel %vm195_vm0, %v4569_v17, %v4568_v62  ;;  %v428_v62 = vld [vmem:[#allocation2 + $0x120] sm:$0xff]  ;;  %v429_v17 = vld [vmem:[#allocation2 + $0x128] sm:$0x3] }
 0x1e3   : > { %v1139_v8 = vpop.permute.xlu1 %1138  ;;  %v1432_v36 = vsel %vm1384_vm3, %v1367_v54, %v4571_v15  ;;  %v4576_v54 = vld [vmem:[#allocation36_spill] sm:$0xff] }
 0x1e4   : > { %v1205_v0 = vpop.permute.xlu0 %1204  ;;  %v1497_v20 = vsel %vm1449_vm4, %v1432_v36, %v979_v51 }
 0x1e5   : > { %990 = vrot.lane.b32.xlu1 %v4556_v7, %s2529_s6  ;;  %v1562_v59 = vsel %vm1514_vm5, %v1497_v20, %v1071_v33 }
 0x1e6   : > { %1080 = vrot.lane.b32.xlu0 %v4554_v16, %s2530_s11  ;;  %v4570_v16 = vld [vmem:[#allocation85_spill] sm:$0xff] }
 0x1e7   : > { %v1175_v35 = vpop.permute.xlu1 %1174  ;;  %v1430_v26 = vsel %vm1384_vm3, %v1365_v4, %v4570_v16  ;;  %v3983_v16 = vpack.c.bf16 %v429_v17, %v428_v62  ;;  %v4582_v17 = vld [vmem:[#allocation76_spill] sm:$0xff] }
 0x1e8   : > { %v1265_v50 = vpop.permute.xlu0 %1264  ;;  %v1660_v53 = vsel %vm1644_vm7, %v1595_v57, %v1175_v35  ;;  %v1495_v41 = vsel %vm1449_vm4, %v1430_v26, %v977_v24  ;;  %v4572_v35 = vld [vmem:[#allocation41_spill] sm:$0xff]  ;;  %v1627_v24 = vsel %vm1579_vm6, %v1562_v59, %v1139_v8  ;;  %v4573_v8 = vld [vmem:[#allocation31_spill] sm:$0xff] }
 0x1e9   : > { %1050 = vrot.lane.b32.xlu1 %v4557_v11, %s2530_s11  ;;  %v1723_v52 = vsel %vm1709_vm8, %v1658_v18, %v1265_v50  ;;  %v1560_v34 = vsel %vm1514_vm5, %v1495_v41, %v1069_v6  ;;  %v469_v57 = vld [vmem:[#allocation2 + $0x268] sm:$0x3]  ;;  %v1006_v15 = vshll.u32 %v3983_v16, 16 }
 0x1ea   : > { %1116 = vrot.lane.b32.xlu0 %v4562_v63, %s2531_s23  ;;  %v1625_v1 = vsel %vm1579_vm6, %v1560_v34, %v1137_v28  ;;  %v3990_v18 = vpack.c.bf16 %v469_v57, %v468_v31 }
 0x1eb   : > { %v1207_v38 = vpop.permute.xlu1 %1206  ;;  %v1690_v51 = vsel %vm1644_vm7, %v1625_v1, %v1205_v0  ;;  %v3953_v0 = vrot.slane %v4573_v8, 1 }
 0x1ec   : > { %v1297_v43 = vpop.permute.xlu0 %1296  ;;  %v1692_v6 = vsel %vm1644_vm7, %v1627_v24, %v1207_v38  ;;  %v1020_v41 = vshll.u32 %v3990_v18, 16  ;;  %v1018_v34 = vshrl.u32 %v3990_v18, 16 }
 0x1ed   : > { %1082 = vrot.lane.b32.xlu1 %v4567_v3, %s2530_s11  ;;  %v1755_v33 = vsel %vm1709_vm8, %v1690_v51, %v1297_v43  ;;  %v4574_v43 = vld [vmem:[#allocation16_spill] sm:$0xff]  ;;  %v2347_v32 = vcombine.low %v3935_v42, %v3953_v0  ;;  %v4577_v51 = vld [vmem:[#allocation46_spill] sm:$0xff] }
 0x1ee   : > { %1148 = vrot.lane.b32.xlu0 %v3848_v2, %s2531_s23  ;;  %v1022_v59 = vrot.slane %v1020_v41, 1 }
 0x1ef   : > { %v1267_v19 = vpop.permute.xlu1 %1266 }
 0x1f0   : > { %v1725_v12 = vsel %vm1709_vm8, %v1660_v53, %v1267_v19  ;;  %v3928_v10 = vpop.permute.xlu0 %912  ;;  %v1004_v19 = vshrl.u32 %v3983_v16, 16  ;;  %v4007_v24 = vor.u32 %v1022_v59, %v1018_v34  ;;  %v1089_v59 = vrot.slane %v3983_v16, 1 }
 0x1f1   : > { %v2324_v5 = vcombine.low %v1723_v52, %v1725_v12  ;;  %1118 = vrot.lane.b32.xlu1 %v4572_v35, %s2531_s23 }
 0x1f2   : > { %1184 = vrot.lane.b32.xlu0 %v4555_v25, %s2532_s29 }
 0x1f3   : > { %v1299_v50 = vpop.permute.xlu1 %1298  ;;  %2102 = vmatmul.mubr.bf16.gmra.mrb[12].mxu0 %v2324_v5 }
 0x1f4   : > { %v1757_v14 = vsel %vm1709_vm8, %v1692_v6, %v1299_v50  ;;  %v949_v23 = vpop.permute.xlu0 %948  ;;  %2363 = vmatprep.mubr.msk.bf16.mxu0 %vm195_vm0, %v2327_v13  ;;  %v1008_v13 = vrot.slane %v1006_v15, 1  ;;  %v4578_v6 = vld [vmem:[#allocation6_spill] sm:$0xff] }
 0x1f5   : > { %v2340_v37 = vcombine.low %v1755_v33, %v1757_v14  ;;  %1150 = vrot.lane.b32.xlu1 %v3935_v42, %s2531_s23  ;;  %v1337_v50 = vsel %vm195_vm0, %v4578_v6, %v4577_v51  ;;  %v4579_v33 = vld [vmem:[#allocation52_spill] sm:$0xff] }
 0x1f6   : > { %1216 = vrot.lane.b32.xlu0 %v4556_v7, %s2532_s29  ;;  %v4000_v12 = vor.u32 %v1008_v13, %v1004_v19  ;;  %v1339_v14 = vsel %vm195_vm0, %v2930_v48, %v4579_v33  ;;  %v4583_v13 = vld [vmem:[#allocation61_spill] sm:$0xff]  ;;  %v4584_v51 = vld [vmem:[#allocation64_spill] sm:$0xff] }
 0x1f7   : > { %v3950_v28 = vpop.permute.xlu1 %914  ;;  %2166 = vmatmul.mubr.bf16.gmra.mrb[12].mxu1 %v2340_v37  ;;  %v4580_v37 = vld [vmem:[#allocation43_spill] sm:$0xff]  ;;  %v1369_v41 = vsel %vm195_vm0, %v3027_v58, %v4583_v13  ;;  %v2329_v58 = vcombine.low %v4545_v27, %v4562_v63  ;;  %v470_v13 = vld [vmem:[#allocation2 + $0x270] sm:$0xff] }
 0x1f8   : > { %v3955_v38 = vpop.permute.xlu0 %980  ;;  %2371 = vmatprep.mubr.msk.bf16.mxu1 %vm195_vm0, %v2343_v46  ;;  %v4575_v46 = vld [vmem:[#allocation24_spill] sm:$0xff] }
 0x1f9   : > { %1186 = vrot.lane.b32.xlu1 %v4574_v43, %s2532_s29 }
 0x1fa   : > { %1276 = vrot.lane.b32.xlu0 %v4557_v11, %s2533_s5 }
 0x1fb   : > { %v951_v4 = vpop.permute.xlu1 %950 }
 0x1fc   : > { %v1041_v29 = vpop.permute.xlu0 %1040 }
 0x1fd   : > { %1218 = vrot.lane.b32.xlu1 %v4573_v8, %s2532_s29 }
 0x1fe   : > { %1308 = vrot.lane.b32.xlu0 %v4567_v3, %s2533_s5 }
 0x1ff   : > { %v3971_v30 = vpop.permute.xlu1 %982 }
 0x200   : > { %v3973_v45 = vpop.permute.xlu0 %1072 }
 0x201   : > { %1278 = vrot.lane.b32.xlu1 %v4575_v46, %s2533_s5 }
 0x202   : > { %924 = vrot.lane.b32.xlu0 %v3935_v42, %s2527_s27 }
 0x203   : > { %v1043_v49 = vpop.permute.xlu1 %1042 }
 0x204   : > { %v1109_v11 = vpop.permute.xlu0 %1108 }
 0x205   : > { %1310 = vrot.lane.b32.xlu1 %v4576_v54, %s2533_s5 }
 0x206   : > { %960 = vrot.lane.b32.xlu0 %v4574_v43, %s2529_s6 }
 0x207   : > { %v1075_v3 = vpop.permute.xlu1 %1074 }
 0x208   : > { %v1141_v26 = vpop.permute.xlu0 %1140 }
 0x209   : > { %926 = vrot.lane.b32.xlu1 %v3953_v0, %s2527_s27 }
 0x20a   : > { %992 = vrot.lane.b32.xlu0 %v4573_v8, %s2529_s6 }
 0x20b   : > { %v1111_v36 = vpop.permute.xlu1 %1110 }
 0x20c   : > { %v1177_v53 = vpop.permute.xlu0 %1176 }
 0x20d   : > { %962 = vrot.lane.b32.xlu1 %v3983_v16, %s2529_s6 }
 0x20e   : > { %1052 = vrot.lane.b32.xlu0 %v4575_v46, %s2530_s11  ;;  %v4581_v46 = vld [vmem:[#allocation73_spill] sm:$0xff] }
 0x20f   : > { %v1143_v20 = vpop.permute.xlu1 %1142  ;;  %v1402_v62 = vsel %vm1384_vm3, %v1337_v50, %v4581_v46  ;;  %v431_v46 = vld [vmem:[#allocation2 + $0x138] sm:$0x3] }
 0x210   : > { %v1209_v52 = vpop.permute.xlu0 %1208  ;;  %v1467_v57 = vsel %vm1449_vm4, %v1402_v62, %v949_v23  ;;  %v1371_v23 = vsel %vm195_vm0, %v3065_v22, %v4584_v51 }
 0x211   : > { %994 = vrot.lane.b32.xlu1 %v3990_v18, %s2529_s6  ;;  %v1532_v48 = vsel %vm1514_vm5, %v1467_v57, %v1041_v29  ;;  %v1434_v29 = vsel %vm1384_vm3, %v1369_v41, %v3928_v10  ;;  %v430_v10 = vld [vmem:[#allocation2 + $0x130] sm:$0xff] }
 0x212   : > { %1084 = vrot.lane.b32.xlu0 %v4576_v54, %s2530_s11  ;;  %v1404_v54 = vsel %vm1384_vm3, %v1339_v14, %v4582_v17 }
 0x213   : > { %v1179_v5 = vpop.permute.xlu1 %1178  ;;  %v1469_v15 = vsel %vm1449_vm4, %v1404_v54, %v951_v4  ;;  %v1597_v4 = vsel %vm1579_vm6, %v1532_v48, %v1109_v11  ;;  %v1499_v11 = vsel %vm1449_vm4, %v1434_v29, %v3955_v38  ;;  %v1091_v38 = vrot.slane %v3990_v18, 1 }
 0x214   : > { %v1269_v1 = vpop.permute.xlu0 %1268  ;;  %v1534_v34 = vsel %vm1514_vm5, %v1469_v15, %v1043_v49  ;;  %v1436_v49 = vsel %vm1384_vm3, %v1371_v23, %v3950_v28  ;;  %v1662_v50 = vsel %vm1644_vm7, %v1597_v4, %v1177_v53  ;;  %v1564_v28 = vsel %vm1514_vm5, %v1499_v11, %v3973_v45 }
 0x215   : > { %1054 = vrot.lane.b32.xlu1 %v4000_v12, %s2530_s11  ;;  %v1599_v6 = vsel %vm1579_vm6, %v1534_v34, %v1111_v36  ;;  %v1501_v36 = vsel %vm1449_vm4, %v1436_v49, %v3971_v30  ;;  %v1727_v14 = vsel %vm1709_vm8, %v1662_v50, %v1269_v1  ;;  %v1629_v30 = vsel %vm1579_vm6, %v1564_v28, %v1141_v26  ;;  %v471_v26 = vld [vmem:[#allocation2 + $0x278] sm:$0x3]  ;;  %v4586_v28 = vld [vmem:[#allocation54_spill] sm:$0xff] }
 0x216   : > { %1120 = vrot.lane.b32.xlu0 %v4580_v37, %s2531_s23  ;;  %v1664_v22 = vsel %vm1644_vm7, %v1599_v6, %v1179_v5  ;;  %v1566_v53 = vsel %vm1514_vm5, %v1501_v36, %v1075_v3  ;;  %v1694_v62 = vsel %vm1644_vm7, %v1629_v30, %v1209_v52  ;;  %v4067_v3 = vpack.c.bf16 %v431_v46, %v430_v10 }
 0x217   : > { %v1211_v31 = vpop.permute.xlu1 %1210  ;;  %v1631_v1 = vsel %vm1579_vm6, %v1566_v53, %v1143_v20  ;;  %v1343_v53 = vsel %vm195_vm0, %v4525_v61, %v4586_v28 }
 0x218   : > { %v1301_v19 = vpop.permute.xlu0 %1300  ;;  %v1696_v45 = vsel %vm1644_vm7, %v1631_v1, %v1211_v31  ;;  %v1234_v52 = vshll.u32 %v4067_v3, 16  ;;  %v1232_v48 = vshrl.u32 %v4067_v3, 16  ;;  %v4588_v1 = vld [vmem:[#allocation78_spill] sm:$0xff] }
 0x219   : > { %1086 = vrot.lane.b32.xlu1 %v4007_v24, %s2530_s11  ;;  %v1759_v54 = vsel %vm1709_vm8, %v1694_v62, %v1301_v19  ;;  %v4078_v19 = vpack.c.bf16 %v471_v26, %v470_v13  ;;  %v1408_v62 = vsel %vm1384_vm3, %v1343_v53, %v4588_v1  ;;  %v4589_v13 = vld [vmem:[#allocation63_spill] sm:$0xff] }
 0x21a   : > { %1152 = vrot.lane.b32.xlu0 %v3953_v0, %s2531_s23  ;;  %v1236_v34 = vrot.slane %v1234_v52, 1 }
 0x21b   : > { %v1271_v33 = vpop.permute.xlu1 %1270  ;;  %v1248_v51 = vshll.u32 %v4078_v19, 16  ;;  %v1246_v9 = vshrl.u32 %v4078_v19, 16 }
 0x21c   : > { %v1729_v27 = vsel %vm1709_vm8, %v1664_v22, %v1271_v33  ;;  %v4052_v63 = vpop.permute.xlu0 %916  ;;  %v1237_v6 = vor.u32 %v1236_v34, %v1232_v48 }
 0x21d   : > { %v2326_v5 = vcombine.low %v1727_v14, %v1729_v27  ;;  %1122 = vrot.lane.b32.xlu1 %v1089_v59, %s2531_s23  ;;  %v1250_v2 = vrot.slane %v1248_v51, 1 }
 0x21e   : > { %1188 = vrot.lane.b32.xlu0 %v3983_v16, %s2532_s29 }
 0x21f   : > { %v1303_v17 = vpop.permute.xlu1 %1302  ;;  %2110 = vmatmul.mubr.bf16.gmra.mrb[16].mxu0 %v2326_v5  ;;  %v1251_v29 = vor.u32 %v1250_v2, %v1246_v9  ;;  %v4587_v5 = vld [vmem:[#allocation75_spill] sm:$0xff] }
 0x220   : > { %v1761_v57 = vsel %vm1709_vm8, %v1696_v45, %v1303_v17  ;;  %v953_v15 = vpop.permute.xlu0 %952  ;;  %2364 = vmatprep.mubr.msk.bf16.mxu0 %vm195_vm0, %v2329_v58 }
 0x221   : > { %v2342_v20 = vcombine.low %v1759_v54, %v1761_v57  ;;  %1154 = vrot.lane.b32.xlu1 %v1091_v38, %s2531_s23 }
 0x222   : > { %1220 = vrot.lane.b32.xlu0 %v3990_v18, %s2532_s29 }
 0x223   : > { %v919_v31 = vpop.permute.xlu1 %918  ;;  %2174 = vmatmul.mubr.bf16.gmra.mrb[16].mxu1 %v2342_v20  ;;  %v4590_v20 = vld [vmem:[#allocation66_spill] sm:$0xff] }
 0x224   : > { %v985_v41 = vpop.permute.xlu0 %984  ;;  %2372 = vmatprep.mubr.msk.bf16.mxu1 %vm195_vm0, %v2345_v55  ;;  %v1375_v52 = vsel %vm195_vm0, %v4521_v44, %v4590_v20 }
 0x225   : > { %1190 = vrot.lane.b32.xlu1 %v4067_v3, %s2532_s29 }
 0x226   : > { %1280 = vrot.lane.b32.xlu0 %v4000_v12, %s2533_s5 }
 0x227   : > { %v955_v23 = vpop.permute.xlu1 %954 }
 0x228   : > { %v1045_v4 = vpop.permute.xlu0 %1044  ;;  %v1473_v54 = vsel %vm1449_vm4, %v1408_v62, %v955_v23 }
 0x229   : > { %1222 = vrot.lane.b32.xlu1 %v4078_v19, %s2532_s29 }
 0x22a   : > { %1312 = vrot.lane.b32.xlu0 %v4007_v24, %s2533_s5  ;;  %v4585_v24 = vld [vmem:[#allocation51_spill] sm:$0xff] }
 0x22b   : > { %v987_v55 = vpop.permute.xlu1 %986  ;;  %v1341_v46 = vsel %vm195_vm0, %v2928_v47, %v4585_v24  ;;  %v1373_v47 = vsel %vm195_vm0, %v4517_v60, %v4589_v13  ;;  %v1440_v60 = vsel %vm1384_vm3, %v1375_v52, %v919_v31 }
 0x22c   : > { %v1077_v58 = vpop.permute.xlu0 %1076  ;;  %v1406_v30 = vsel %vm1384_vm3, %v1341_v46, %v4587_v5  ;;  %v1438_v51 = vsel %vm1384_vm3, %v1373_v47, %v4052_v63  ;;  %v1505_v9 = vsel %vm1449_vm4, %v1440_v60, %v987_v55  ;;  %v4591_v60 = vld [vmem:[#allocation53_spill] sm:$0xff] }
 0x22d   : > { %1282 = vrot.lane.b32.xlu1 %v1237_v6, %s2533_s5  ;;  %v1471_v17 = vsel %vm1449_vm4, %v1406_v30, %v953_v15  ;;  %v2331_v15 = vcombine.low %v4572_v35, %v4580_v37  ;;  %v1503_v44 = vsel %vm1449_vm4, %v1438_v51, %v985_v41 }
 0x22e   : > { %v1536_v26 = vsel %vm1514_vm5, %v1471_v17, %v1045_v4  ;;  %v1568_v63 = vsel %vm1514_vm5, %v1503_v44, %v1077_v58  ;;  %v4146_v58 = vld [vmem:[%s4354_s2] ss:$0 sm:$0xff]  ;;  %v1317_v44 = vrot.slane %v4067_v3, 1 }
 0x22f   : > { %v1047_v49 = vpop.permute.xlu1 %1046 }
 0x230   : > { %v1113_v12 = vpop.permute.xlu0 %1112  ;;  %v1538_v61 = vsel %vm1514_vm5, %v1473_v54, %v1047_v49 }
 0x231   : > { %1314 = vrot.lane.b32.xlu1 %v1251_v29, %s2533_s5  ;;  %v1601_v48 = vsel %vm1579_vm6, %v1536_v26, %v1113_v12 }
 0x233   : > { %v1079_v50 = vpop.permute.xlu1 %1078 }
 0x234   : > { %v1145_v22 = vpop.permute.xlu0 %1144  ;;  %v1570_v31 = vsel %vm1514_vm5, %v1505_v9, %v1079_v50  ;;  %v4593_v9 = vld [vmem:[#allocation77_spill] sm:$0xff] }
 0x235   : > { %v1633_v49 = vsel %vm1579_vm6, %v1568_v63, %v1145_v22 }
 0x237   : > { %v1115_v33 = vpop.permute.xlu1 %1114 }
 0x238   : > { %v1181_v11 = vpop.permute.xlu0 %1180  ;;  %v1603_v34 = vsel %vm1579_vm6, %v1538_v61, %v1115_v33 }
 0x239   : > { %v1666_v23 = vsel %vm1644_vm7, %v1601_v48, %v1181_v11 }
 0x23b   : > { %v1147_v36 = vpop.permute.xlu1 %1146 }
 0x23c   : > { %v1213_v14 = vpop.permute.xlu0 %1212  ;;  %v1635_v12 = vsel %vm1579_vm6, %v1570_v31, %v1147_v36 }
 0x23d   : > { %v1698_v33 = vsel %vm1644_vm7, %v1633_v49, %v1213_v14 }
 0x23f   : > { %v1183_v27 = vpop.permute.xlu1 %1182 }
 0x240   : > { %v1273_v10 = vpop.permute.xlu0 %1272  ;;  %v1668_v4 = vsel %vm1644_vm7, %v1603_v34, %v1183_v27 }
 0x241   : > { %v1731_v2 = vsel %vm1709_vm8, %v1666_v23, %v1273_v10  ;;  %v1345_v23 = vsel %vm195_vm0, %v4530_v40, %v4591_v60 }
 0x243   : > { %v1215_v45 = vpop.permute.xlu1 %1214 }
 0x244   : > { %v1305_v57 = vpop.permute.xlu0 %1304  ;;  %v1700_v41 = vsel %vm1644_vm7, %v1635_v12, %v1215_v45 }
 0x245   : > { %v1763_v11 = vsel %vm1709_vm8, %v1698_v33, %v1305_v57  ;;  %v4595_v33 = vld [vmem:[#allocation65_spill] sm:$0xff] }
 0x246   : > { %v1377_v40 = vsel %vm195_vm0, %v4531_v56, %v4595_v33 }
 0x247   : > { %v1275_v6 = vpop.permute.xlu1 %1274 }
 0x248   : > { %v1733_v35 = vsel %vm1709_vm8, %v1668_v4, %v1275_v6  ;;  %v4133_v37 = vpop.permute.xlu0 %920  ;;  %v4592_v4 = vld [vmem:[#allocation56_spill] sm:$0xff] }
 0x249   : > { %v2328_v29 = vcombine.low %v1731_v2, %v1733_v35  ;;  %v1347_v6 = vsel %vm195_vm0, %v4552_v39, %v4592_v4  ;;  %v1410_v2 = vsel %vm1384_vm3, %v1345_v23, %v4593_v9  ;;  %v4594_v35 = vld [vmem:[#allocation80_spill] sm:$0xff]  ;;  %v1442_v56 = vsel %vm1384_vm3, %v1377_v40, %v4133_v37  ;;  %v4597_v40 = vld [vmem:[#allocation55_spill] sm:$0xff] }
 0x24a   : > { %v1412_v63 = vsel %vm1384_vm3, %v1347_v6, %v4594_v35 }
 0x24b   : > { %v1307_v55 = vpop.permute.xlu1 %1306  ;;  %2118 = vmatmul.mubr.bf16.gmra.mrb[20].mxu0 %v2328_v29 }
 0x24c   : > { %v1765_v27 = vsel %vm1709_vm8, %v1700_v41, %v1307_v55  ;;  %v957_v10 = vpop.permute.xlu0 %956  ;;  %2365 = vmatprep.mubr.msk.bf16.mxu0 %vm195_vm0, %v2331_v15  ;;  %v4596_v41 = vld [vmem:[#allocation68_spill] sm:$0xff] }
 0x24d   : > { %v2344_v50 = vcombine.low %v1763_v11, %v1765_v27  ;;  %v1475_v29 = vsel %vm1449_vm4, %v1410_v2, %v957_v10  ;;  %v1379_v39 = vsel %vm195_vm0, %v4550_v21, %v4596_v41  ;;  %v2333_v10 = vcombine.low %v1089_v59, %v1317_v44 }
 0x24e   : > { %v2079_v22 = vpop.f32.mrb[0].mxu0  ;;  %v1349_v41 = vsel %vm195_vm0, %v4555_v25, %v4597_v40 }
 0x24f   : > { %v2080_v36 = vadd.f32 %v4146_v58, %v2079_v22  ;;  %v923_v14 = vpop.permute.xlu1 %922  ;;  %v2081_v24 = vpop.f32.mrb[1].mxu0  ;;  %2182 = vmatmul.mubr.bf16.gmra.mrb[20].mxu1 %v2344_v50  ;;  %v1319_v50 = vrot.slane %v4078_v19, 1 }
 0x250   : > { %v989_v46 = vpop.permute.xlu0 %988  ;;  %v2082_v28 = vpop.f32.mrb[2].mxu0  ;;  %2373 = vmatprep.mubr.msk.bf16.mxu1 %vm195_vm0, %v2347_v32  ;;  %v1444_v22 = vsel %vm1384_vm3, %v1379_v39, %v923_v14  ;;  %v4598_v39 = vld [vmem:[#allocation57_spill] sm:$0xff] }
 0x251   : > { %2206 = vst.msk [vmem:[%s4152_s8] sm:$0xff] %vm195_vm0, %v2080_v36  ;;  %v2083_v53 = vadd.f32 %v4146_v58, %v2082_v28  ;;  %v2084_v5 = vpop.f32.mrb[3].mxu0  ;;  %v1507_v28 = vsel %vm1449_vm4, %v1442_v56, %v989_v46 }
 0x252   : > { %v2143_v30 = vpop.f32.mrb[0].mxu1 }
 0x253   : > { %2207 = vst.msk [vmem:[%s4152_s8 + $0x8] sm:$0xff] %vm195_vm0, %v2083_v53  ;;  %v2144_v1 = vadd.f32 %v4146_v58, %v2143_v30  ;;  %v959_v62 = vpop.permute.xlu1 %958  ;;  %v2145_v45 = vpop.f32.mrb[1].mxu1 }
 0x254   : > { %v1049_v17 = vpop.permute.xlu0 %1048  ;;  %v2146_v54 = vpop.f32.mrb[2].mxu1  ;;  %v1477_v49 = vsel %vm1449_vm4, %v1412_v63, %v959_v62 }
 0x255   : > { %2222 = vst.msk [vmem:[%s4152_s8 + $0x80] sm:$0xff] %vm195_vm0, %v2144_v1  ;;  %v2147_v42 = vadd.f32 %v4146_v58, %v2146_v54  ;;  %v2148_v0 = vpop.f32.mrb[3].mxu1  ;;  %v1540_v3 = vsel %vm1514_vm5, %v1475_v29, %v1049_v17 }
 0x257   : > { %2223 = vst.msk [vmem:[%s4152_s8 + $0x88] sm:$0xff] %vm195_vm0, %v2147_v42  ;;  %v991_v32 = vpop.permute.xlu1 %990 }
 0x258   : > { %v1081_v57 = vpop.permute.xlu0 %1080  ;;  %v1509_v53 = vsel %vm1449_vm4, %v1444_v22, %v991_v32 }
 0x259   : > { %v1572_v19 = vsel %vm1514_vm5, %v1507_v28, %v1081_v57  ;;  %v4602_v28 = vld [vmem:[#allocation69_spill] sm:$0xff] }
 0x25b   : > { %v1051_v13 = vpop.permute.xlu1 %1050 }
 0x25c   : > { %v1117_v47 = vpop.permute.xlu0 %1116  ;;  %v1542_v55 = vsel %vm1514_vm5, %v1477_v49, %v1051_v13 }
 0x25d   : > { %v1605_v11 = vsel %vm1579_vm6, %v1540_v3, %v1117_v47  ;;  %v2349_v47 = vcombine.low %v1091_v38, %v1319_v50  ;;  %v1351_v3 = vsel %vm195_vm0, %v4574_v43, %v4598_v39 }
 0x25f   : > { %v1083_v26 = vpop.permute.xlu1 %1082 }
 0x260   : > { %v1149_v61 = vpop.permute.xlu0 %1148  ;;  %v1574_v37 = vsel %vm1514_vm5, %v1509_v53, %v1083_v26  ;;  %v1383_v53 = vsel %vm195_vm0, %v4573_v8, %v4602_v28 }
 0x261   : > { %v1637_v14 = vsel %vm1579_vm6, %v1572_v19, %v1149_v61 }
 0x263   : > { %v1119_v20 = vpop.permute.xlu1 %1118 }
 0x264   : > { %v1185_v52 = vpop.permute.xlu0 %1184  ;;  %v1607_v27 = vsel %vm1579_vm6, %v1542_v55, %v1119_v20  ;;  %v4599_v55 = vld [vmem:[#allocation79_spill] sm:$0xff] }
 0x265   : > { %v1670_v21 = vsel %vm1644_vm7, %v1605_v11, %v1185_v52  ;;  %v1414_v11 = vsel %vm1384_vm3, %v1349_v41, %v4599_v55 }
 0x267   : > { %v1151_v48 = vpop.permute.xlu1 %1150 }
 0x268   : > { %v1217_v34 = vpop.permute.xlu0 %1216  ;;  %v1639_v1 = vsel %vm1579_vm6, %v1574_v37, %v1151_v48 }
 0x269   : > { %v1702_v46 = vsel %vm1644_vm7, %v1637_v14, %v1217_v34 }
 0x26b   : > { %v1187_v15 = vpop.permute.xlu1 %1186 }
 0x26c   : > { %v1277_v51 = vpop.permute.xlu0 %1276  ;;  %v1672_v36 = vsel %vm1644_vm7, %v1607_v27, %v1187_v15  ;;  %v4600_v27 = vld [vmem:[#allocation81_spill] sm:$0xff] }
 0x26d   : > { %v1735_v5 = vsel %vm1709_vm8, %v1670_v21, %v1277_v51 }
 0x26f   : > { %v1219_v31 = vpop.permute.xlu1 %1218 }
 0x270   : > { %v1309_v12 = vpop.permute.xlu0 %1308  ;;  %v1704_v45 = vsel %vm1644_vm7, %v1639_v1, %v1219_v31 }
 0x271   : > { %v1767_v0 = vsel %vm1709_vm8, %v1702_v46, %v1309_v12 }
 0x273   : > { %v1279_v24 = vpop.permute.xlu1 %1278 }
 0x274   : > { %v1737_v16 = vsel %vm1709_vm8, %v1672_v36, %v1279_v24  ;;  %v925_v59 = vpop.permute.xlu0 %924  ;;  %v4601_v36 = vld [vmem:[#allocation67_spill] sm:$0xff] }
 0x275   : > { %v2330_v30 = vcombine.low %v1735_v5, %v1737_v16  ;;  %v1381_v25 = vsel %vm195_vm0, %v4556_v7, %v4601_v36 }
 0x276   : > { %v2087_v62 = vpop.f32.mrb[4].mxu0  ;;  %v1446_v5 = vsel %vm1384_vm3, %v1381_v25, %v925_v59 }
 0x277   : > { %v2088_v17 = vadd.f32 %v4146_v58, %v2087_v62  ;;  %v1311_v54 = vpop.permute.xlu1 %1310  ;;  %v2089_v42 = vpop.f32.mrb[5].mxu0  ;;  %2126 = vmatmul.mubr.bf16.gmra.mrb[24].mxu0 %v2330_v30 }
 0x278   : > { %v1769_v32 = vsel %vm1709_vm8, %v1704_v45, %v1311_v54  ;;  %v961_v57 = vpop.permute.xlu0 %960  ;;  %v2090_v13 = vpop.f32.mrb[6].mxu0  ;;  %2366 = vmatprep.mubr.msk.bf16.mxu0 %vm195_vm0, %v2333_v10  ;;  %v1416_v10 = vsel %vm1384_vm3, %v1351_v3, %v4600_v27 }
 0x279   : > { %2208 = vst.msk [vmem:[%s4152_s8 + $0x10] sm:$0xff] %vm195_vm0, %v2088_v17  ;;  %v2346_v26 = vcombine.low %v1767_v0, %v1769_v32  ;;  %v2091_v61 = vadd.f32 %v4146_v58, %v2090_v13  ;;  %v2092_v20 = vpop.f32.mrb[7].mxu0  ;;  %v1479_v22 = vsel %vm1449_vm4, %v1414_v11, %v961_v57 }
 0x27a   : > { %v2151_v52 = vpop.f32.mrb[4].mxu1 }
 0x27b   : > { %2209 = vst.msk [vmem:[%s4152_s8 + $0x18] sm:$0xff] %vm195_vm0, %v2091_v61  ;;  %v2152_v48 = vadd.f32 %v4146_v58, %v2151_v52  ;;  %v927_v34 = vpop.permute.xlu1 %926  ;;  %v2153_v15 = vpop.f32.mrb[5].mxu1  ;;  %2190 = vmatmul.mubr.bf16.gmra.mrb[24].mxu1 %v2346_v26 }
 0x27c   : > { %v993_v51 = vpop.permute.xlu0 %992  ;;  %v2154_v60 = vpop.f32.mrb[6].mxu1  ;;  %2374 = vmatprep.mubr.msk.bf16.mxu1 %vm195_vm0, %v2349_v47  ;;  %v1448_v30 = vsel %vm1384_vm3, %v1383_v53, %v927_v34 }
 0x27d   : > { %2224 = vst.msk [vmem:[%s4152_s8 + $0x90] sm:$0xff] %vm195_vm0, %v2152_v48  ;;  %v2155_v18 = vadd.f32 %v4146_v58, %v2154_v60  ;;  %v2156_v38 = vpop.f32.mrb[7].mxu1  ;;  %v1511_v8 = vsel %vm1449_vm4, %v1446_v5, %v993_v51 }
 0x27f   : > { %2225 = vst.msk [vmem:[%s4152_s8 + $0x98] sm:$0xff] %vm195_vm0, %v2155_v18  ;;  %v963_v23 = vpop.permute.xlu1 %962 }
 0x280   : > { %v1053_v4 = vpop.permute.xlu0 %1052  ;;  %v1481_v21 = vsel %vm1449_vm4, %v1416_v10, %v963_v23 }
 0x281   : > { %v1544_v24 = vsel %vm1514_vm5, %v1479_v22, %v1053_v4 }
 0x283   : > { %v995_v6 = vpop.permute.xlu1 %994 }
 0x284   : > { %v1085_v44 = vpop.permute.xlu0 %1084  ;;  %v1513_v59 = vsel %vm1449_vm4, %v1448_v30, %v995_v6 }
 0x285   : > { %v1576_v42 = vsel %vm1514_vm5, %v1511_v8, %v1085_v44 }
 0x287   : > { %v1055_v9 = vpop.permute.xlu1 %1054 }
 0x288   : > { %v1121_v2 = vpop.permute.xlu0 %1120  ;;  %v1546_v43 = vsel %vm1514_vm5, %v1481_v21, %v1055_v9 }
 0x289   : > { %v1609_v16 = vsel %vm1579_vm6, %v1544_v24, %v1121_v2 }
 0x28b   : > { %v1087_v35 = vpop.permute.xlu1 %1086 }
 0x28c   : > { %v1153_v63 = vpop.permute.xlu0 %1152  ;;  %v1578_v0 = vsel %vm1514_vm5, %v1513_v59, %v1087_v35 }
 0x28d   : > { %v1641_v26 = vsel %vm1579_vm6, %v1576_v42, %v1153_v63 }
 0x28f   : > { %v1123_v31 = vpop.permute.xlu1 %1122 }
 0x290   : > { %v1189_v29 = vpop.permute.xlu0 %1188  ;;  %v1611_v19 = vsel %vm1579_vm6, %v1546_v43, %v1123_v31 }
 0x291   : > { %v1674_v7 = vsel %vm1644_vm7, %v1609_v16, %v1189_v29 }
 0x293   : > { %v1155_v49 = vpop.permute.xlu1 %1154 }
 0x294   : > { %v1221_v12 = vpop.permute.xlu0 %1220  ;;  %v1643_v61 = vsel %vm1579_vm6, %v1578_v0, %v1155_v49 }
 0x295   : > { %v1706_v52 = vsel %vm1644_vm7, %v1641_v26, %v1221_v12 }
 0x297   : > { %v1191_v33 = vpop.permute.xlu1 %1190 }
 0x298   : > { %v1281_v50 = vpop.permute.xlu0 %1280  ;;  %v1676_v14 = vsel %vm1644_vm7, %v1611_v19, %v1191_v33 }
 0x299   : > { %v1739_v45 = vsel %vm1709_vm8, %v1674_v7, %v1281_v50 }
 0x29b   : > { %v1223_v56 = vpop.permute.xlu1 %1222 }
 0x29c   : > { %v1313_v32 = vpop.permute.xlu0 %1312  ;;  %v1708_v48 = vsel %vm1644_vm7, %v1643_v61, %v1223_v56 }
 0x29d   : > { %v1771_v60 = vsel %vm1709_vm8, %v1706_v52, %v1313_v32 }
 0x29e   : > { %v2095_v37 = vpop.f32.mrb[8].mxu0 }
 0x29f   : > { %v2096_v1 = vadd.f32 %v4146_v58, %v2095_v37  ;;  %v1283_v62 = vpop.permute.xlu1 %1282  ;;  %v2097_v46 = vpop.f32.mrb[9].mxu0 }
 0x2a0   : > { %v1741_v17 = vsel %vm1709_vm8, %v1676_v14, %v1283_v62  ;;  %v2098_v54 = vpop.f32.mrb[10].mxu0 }
 0x2a1   : > { %2210 = vst.msk [vmem:[%s4152_s8 + $0x20] sm:$0xff] %vm195_vm0, %v2096_v1  ;;  %v2332_v57 = vcombine.low %v1739_v45, %v1741_v17  ;;  %v2099_v13 = vadd.f32 %v4146_v58, %v2098_v54  ;;  %v2100_v47 = vpop.f32.mrb[11].mxu0 }
 0x2a2   : > { %v2159_v20 = vpop.f32.mrb[8].mxu1 }
 0x2a3   : > { %2211 = vst.msk [vmem:[%s4152_s8 + $0x28] sm:$0xff] %vm195_vm0, %v2099_v13  ;;  %v2160_v34 = vadd.f32 %v4146_v58, %v2159_v20  ;;  %v1315_v15 = vpop.permute.xlu1 %1314  ;;  %2134 = vmatmul.mubr.bf16.gmra.mrb[28].mxu0 %v2332_v57  ;;  %v2161_v51 = vpop.f32.mrb[9].mxu1 }
 0x2a4   : > { %v1773_v18 = vsel %vm1709_vm8, %v1708_v48, %v1315_v15  ;;  %v2162_v38 = vpop.f32.mrb[10].mxu1 }
 0x2a5   : > { %2226 = vst.msk [vmem:[%s4152_s8 + $0xa0] sm:$0xff] %vm195_vm0, %v2160_v34  ;;  %v2348_v23 = vcombine.low %v1771_v60, %v1773_v18  ;;  %v2163_v4 = vadd.f32 %v4146_v58, %v2162_v38  ;;  %v2164_v6 = vpop.f32.mrb[11].mxu1 }
 0x2a7   : > { %2227 = vst.msk [vmem:[%s4152_s8 + $0xa8] sm:$0xff] %vm195_vm0, %v2163_v4  ;;  %2198 = vmatmul.mubr.bf16.gmra.mrb[28].mxu1 %v2348_v23 }
 0x2c6   : > { %v2103_v44 = vpop.f32.mrb[12].mxu0 }
 0x2c7   : > { %v2104_v9 = vadd.f32 %v4146_v58, %v2103_v44  ;;  %v2105_v2 = vpop.f32.mrb[13].mxu0 }
 0x2c8   : > { %v2106_v35 = vpop.f32.mrb[14].mxu0 }
 0x2c9   : > { %2212 = vst.msk [vmem:[%s4152_s8 + $0x30] sm:$0xff] %vm195_vm0, %v2104_v9  ;;  %v2107_v63 = vadd.f32 %v4146_v58, %v2106_v35  ;;  %v2108_v31 = vpop.f32.mrb[15].mxu0 }
 0x2ca   : > { %v2167_v29 = vpop.f32.mrb[12].mxu1 }
 0x2cb   : > { %2213 = vst.msk [vmem:[%s4152_s8 + $0x38] sm:$0xff] %vm195_vm0, %v2107_v63  ;;  %v2168_v49 = vadd.f32 %v4146_v58, %v2167_v29  ;;  %v2169_v12 = vpop.f32.mrb[13].mxu1 }
 0x2cc   : > { %v2170_v33 = vpop.f32.mrb[14].mxu1 }
 0x2cd   : > { %2228 = vst.msk [vmem:[%s4152_s8 + $0xb0] sm:$0xff] %vm195_vm0, %v2168_v49  ;;  %v2171_v40 = vadd.f32 %v4146_v58, %v2170_v33  ;;  %v2172_v41 = vpop.f32.mrb[15].mxu1 }
 0x2cf   : > { %2229 = vst.msk [vmem:[%s4152_s8 + $0xb8] sm:$0xff] %vm195_vm0, %v2171_v40 }
 0x2f2   : > { %v2111_v39 = vpop.f32.mrb[16].mxu0 }
 0x2f3   : > { %v2112_v3 = vadd.f32 %v4146_v58, %v2111_v39  ;;  %v2113_v55 = vpop.f32.mrb[17].mxu0 }
 0x2f4   : > { %v2114_v11 = vpop.f32.mrb[18].mxu0 }
 0x2f5   : > { %2214 = vst.msk [vmem:[%s4152_s8 + $0x40] sm:$0xff] %vm195_vm0, %v2112_v3  ;;  %v2115_v27 = vadd.f32 %v4146_v58, %v2114_v11  ;;  %v2116_v10 = vpop.f32.mrb[19].mxu0 }
 0x2f6   : > { %v2175_v50 = vpop.f32.mrb[16].mxu1 }
 0x2f7   : > { %2215 = vst.msk [vmem:[%s4152_s8 + $0x48] sm:$0xff] %vm195_vm0, %v2115_v27  ;;  %v2176_v56 = vadd.f32 %v4146_v58, %v2175_v50  ;;  %v2177_v22 = vpop.f32.mrb[17].mxu1 }
 0x2f8   : > { %v2178_v21 = vpop.f32.mrb[18].mxu1 }
 0x2f9   : > { %2230 = vst.msk [vmem:[%s4152_s8 + $0xc0] sm:$0xff] %vm195_vm0, %v2176_v56  ;;  %v2179_v36 = vadd.f32 %v4146_v58, %v2178_v21  ;;  %v2180_v25 = vpop.f32.mrb[19].mxu1 }
 0x2fb   : > { %2231 = vst.msk [vmem:[%s4152_s8 + $0xc8] sm:$0xff] %vm195_vm0, %v2179_v36 }
 0x31e   : > { %v2119_v24 = vpop.f32.mrb[20].mxu0 }
 0x31f   : > { %v2120_v43 = vadd.f32 %v4146_v58, %v2119_v24  ;;  %v2121_v28 = vpop.f32.mrb[21].mxu0 }
 0x320   : > { %v2122_v53 = vpop.f32.mrb[22].mxu0 }
 0x321   : > { %2216 = vst.msk [vmem:[%s4152_s8 + $0x50] sm:$0xff] %vm195_vm0, %v2120_v43  ;;  %v2123_v5 = vadd.f32 %v4146_v58, %v2122_v53  ;;  %v2124_v16 = vpop.f32.mrb[23].mxu0 }
 0x322   : > { %v2183_v19 = vpop.f32.mrb[20].mxu1 }
 0x323   : > { %2217 = vst.msk [vmem:[%s4152_s8 + $0x58] sm:$0xff] %vm195_vm0, %v2123_v5  ;;  %v2184_v37 = vadd.f32 %v4146_v58, %v2183_v19  ;;  %v2185_v30 = vpop.f32.mrb[21].mxu1 }
 0x324   : > { %v2186_v7 = vpop.f32.mrb[22].mxu1 }
 0x325   : > { %2232 = vst.msk [vmem:[%s4152_s8 + $0xd0] sm:$0xff] %vm195_vm0, %v2184_v37  ;;  %v2187_v14 = vadd.f32 %v4146_v58, %v2186_v7  ;;  %v2188_v1 = vpop.f32.mrb[23].mxu1 }
 0x327   : > { %2233 = vst.msk [vmem:[%s4152_s8 + $0xd8] sm:$0xff] %vm195_vm0, %v2187_v14 }
 0x34a   : > { %v2127_v62 = vpop.f32.mrb[24].mxu0 }
 0x34b   : > { %v2128_v46 = vadd.f32 %v4146_v58, %v2127_v62  ;;  %v2129_v8 = vpop.f32.mrb[25].mxu0 }
 0x34c   : > { %v2130_v59 = vpop.f32.mrb[26].mxu0 }
 0x34d   : > { %2218 = vst.msk [vmem:[%s4152_s8 + $0x60] sm:$0xff] %vm195_vm0, %v2128_v46  ;;  %v2131_v45 = vadd.f32 %v4146_v58, %v2130_v59  ;;  %v2132_v17 = vpop.f32.mrb[27].mxu0 }
 0x34e   : > { %v2191_v54 = vpop.f32.mrb[24].mxu1 }
 0x34f   : > { %2219 = vst.msk [vmem:[%s4152_s8 + $0x68] sm:$0xff] %vm195_vm0, %v2131_v45  ;;  %v2192_v42 = vadd.f32 %v4146_v58, %v2191_v54  ;;  %v2193_v0 = vpop.f32.mrb[25].mxu1 }
 0x350   : > { %v2194_v32 = vpop.f32.mrb[26].mxu1 }
 0x351   : > { %2234 = vst.msk [vmem:[%s4152_s8 + $0xe0] sm:$0xff] %vm195_vm0, %v2192_v42  ;;  %v2195_v57 = vadd.f32 %v4146_v58, %v2194_v32  ;;  %v2196_v13 = vpop.f32.mrb[27].mxu1 }
 0x353   : > { %2235 = vst.msk [vmem:[%s4152_s8 + $0xe8] sm:$0xff] %vm195_vm0, %v2195_v57 }
 0x376   : > { %v2135_v47 = vpop.f32.mrb[28].mxu0 }
 0x377   : > { %v2136_v26 = vadd.f32 %v4146_v58, %v2135_v47  ;;  %v2137_v61 = vpop.f32.mrb[29].mxu0 }
 0x378   : > { %v2138_v20 = vpop.f32.mrb[30].mxu0 }
 0x379   : > { %2220 = vst.msk [vmem:[%s4152_s8 + $0x70] sm:$0xff] %vm195_vm0, %v2136_v26  ;;  %v2139_v52 = vadd.f32 %v4146_v58, %v2138_v20  ;;  %v2140_v48 = vpop.f32.mrb[31].mxu0 }
 0x37a   : > { %v2199_v34 = vpop.f32.mrb[28].mxu1 }
 0x37b   : > { %2221 = vst.msk [vmem:[%s4152_s8 + $0x78] sm:$0xff] %vm195_vm0, %v2139_v52  ;;  %v2200_v15 = vadd.f32 %v4146_v58, %v2199_v34  ;;  %v2201_v51 = vpop.f32.mrb[29].mxu1 }
 0x37c   : > { %v2202_v60 = vpop.f32.mrb[30].mxu1 }
 0x37d   : > { %2236 = vst.msk [vmem:[%s4152_s8 + $0xf0] sm:$0xff] %vm195_vm0, %v2200_v15  ;;  %v2203_v18 = vadd.f32 %v4146_v58, %v2202_v60  ;;  %v2204_v38 = vpop.f32.mrb[31].mxu1 }
 0x37f   : > { %2237 = vst.msk [vmem:[%s4152_s8 + $0xf8] sm:$0xff] %vm195_vm0, %v2203_v18 }
 0x380 PF: > { %p13_p8 = scmp.ge.s32.totalorder %s2574_s17, 4   ;;  %s4603_s12 = smov %s2512_s13 }
 0x381   : > { %s4604_s13 = smov %s2516_s14  ;;  %s4605_s14 = smov %s2584_s20 }
 0x382   : > { %s4606_s15 = smov %s2574_s17  ;;  %15 = sbr.rel (!%p13_p8) target bundleno = 3 (0x3), region = 74 }
 0x389   :  { %2260 = vsyncpa [#allocation4], 1 }
 0x38a   :  { %2262 = vsyncpa [#allocation4 + $0x1], 1 }

</bundles_post_ra>
